<compile_context>
chip_gen: v7x
topology: tpu7x:2x2x1
jax: 0.10.0
libtpu: 0.0.40
codegen_flags: <defaults>
</compile_context>

<pallas_src>
import math

import numpy as np

import jax
import jax.numpy as jnp
from jax.experimental import pallas as pl
from jax.experimental.pallas import tpu as pltpu

BN_EPS = 1e-5


# ------------------------- static conv-shift helpers ------------------------ #

def _boundary_masks(H, W):
    """(9, HW) 0/1 masks: mask[k, h*W+w] = 1 iff (h+dy, w+dx) is in-bounds,
    with k = (dy+1)*3 + (dx+1) -- the 9 taps of a padding=1 3x3 conv."""
    HW = H * W
    m = np.zeros((9, HW), np.float32)
    for k in range(9):
        dy, dx = k // 3 - 1, k % 3 - 1
        for h in range(H):
            if not 0 <= h + dy < H:
                continue
            for w in range(W):
                if 0 <= w + dx < W:
                    m[k, h * W + w] = 1.0
    return jnp.asarray(m)


def _roll_shifts(H, W):
    """Lane-roll amounts so that roll(x, shift_k)[p] == x[p + dy*W + dx]
    (jnp.roll semantics); wrap-around values are zeroed by the masks."""
    HW = H * W
    return tuple((-((k // 3 - 1) * W + (k % 3 - 1))) % HW for k in range(9))


def _batch_block(B):
    """Largest divisor of B not exceeding ceil(B/2): keeps >= 2 'parallel'
    grid steps (both v7x TensorCores busy) while amortizing per-step cost."""
    if B <= 1:
        return 1
    for bt in range(-(-B // 2), 0, -1):
        if B % bt == 0:
            return bt
    return 1


# ------------------------------ Pallas kernel ------------------------------- #

def _make_ssb_kernel(roll_shifts, Cr, Bt):
    n_taps = len(roll_shifts)

    def kernel(x_ref, mask_ref, fc1_ref, fc2_ref, wa_ref, wb_ref, sam_w_ref,
               wo_cau_ref, wo_sau_ref, shift_ref, scal_ref, o_ref):
        # x_ref:    (Bt, C, HW)  channels on sublanes, HW on lanes
        # mask_ref: (9, HW)      3x3-conv boundary masks (0/1)
        # fc1/fc2:  (Cr, C) / (C, Cr)   SELayer fc weights (no bias)
        # wa_ref:   (9*Cr, C)    SE conv1 taps, rows [k*Cr:(k+1)*Cr] = tap k
        # wb_ref:   (C, 9*Cr)    SE conv2 taps, cols [k*Cr:(k+1)*Cr] = tap k
        # sam_w:    (1, C)       SAM_cat conv_1 weight
        # wo_cau/wo_sau: (C, C)  BN-scaled halves of the output 1x1 conv
        # shift:    (C, 1)       folded conv bias + BN shift
        # scal (SMEM, 6): [sam_b, sig_w_on_avg, sig_w_on_conv, sig_b1, sig_w2, sig_b2]

        def shift_tap(arr, k):
            # arr: (Cr, HW) -> zero-padded spatial shift for 3x3-conv tap k.
            sh = roll_shifts[k]
            rolled = pltpu.roll(arr, sh, axis=1) if sh else arr
            return mask_ref[k:k + 1] * rolled

        for b in range(Bt):                                       # static unroll
            xb = x_ref[b]                                          # (C, HW)

            # ---- SAU (SAM_cat): cheap, consumed first (low vreg pressure) ----
            conv1 = (jnp.dot(sam_w_ref[...], xb,
                             preferred_element_type=jnp.float32)
                     + scal_ref[0])                                # (1, HW)
            avg = jnp.mean(xb, axis=0, keepdims=True)              # (1, HW)
            t = jnp.maximum(scal_ref[1] * avg + scal_ref[2] * conv1
                            + scal_ref[3], 0.0)
            gate = jax.nn.sigmoid(scal_ref[4] * t + scal_ref[5])   # (1, HW)
            sau = xb * gate                                        # (C, HW)
            z = (jnp.dot(wo_sau_ref[...], sau,
                         preferred_element_type=jnp.float32)
                 + shift_ref[...])                                 # (C, HW)

            # ---- CAU (SELayer) -----------------------------------------------
            ch_mean = jnp.mean(xb, axis=1, keepdims=True)          # (C, 1)
            h = jnp.maximum(jnp.dot(fc1_ref[...], ch_mean,
                                    preferred_element_type=jnp.float32), 0.0)
            se_y = jnp.dot(fc2_ref[...], h,
                           preferred_element_type=jnp.float32)     # (C, 1)

            # 3x3 conv #1: tap contraction first (one matmul), then 9 rolls.
            t_all = jnp.dot(wa_ref[...], xb,
                            preferred_element_type=jnp.float32)    # (9*Cr, HW)
            acc = shift_tap(t_all[0:Cr], 0)
            for k in range(1, n_taps):
                acc = acc + shift_tap(t_all[k * Cr:(k + 1) * Cr], k)
            c1 = jnp.maximum(acc, 0.0)                             # (Cr, HW)

            # 3x3 conv #2: im2col slab of 9 rolled copies, single matmul.
            slab = jnp.concatenate([shift_tap(c1, k) for k in range(n_taps)],
                                   axis=0)                         # (9*Cr, HW)
            y1 = jnp.dot(wb_ref[...], slab,
                         preferred_element_type=jnp.float32)       # (C, HW)

            cau = xb * jax.nn.sigmoid(se_y * y1)                   # (C, HW)

            # ---- conv_out: 1x1 conv (BN pre-folded) + shift + ReLU -----------
            z = z + jnp.dot(wo_cau_ref[...], cau,
                            preferred_element_type=jnp.float32)
            o_ref[b] = jnp.maximum(z, 0.0)

    return kernel


# --------------------------------- wrapper ---------------------------------- #

def ssb_forward(x, params):
    """SSB forward (eval-mode BN).  x: (B, C, H, W) float32 NCHW."""
    B, C, H, W = x.shape
    HW = H * W
    Cr = params["se_fc1_w"].shape[0]
    Bt = _batch_block(B)

    x_flat = x.reshape(B, C, HW)                    # NCHW -> (B, C, HW): free
    masks = _boundary_masks(H, W)                   # (9, HW)
    shifts = _roll_shifts(H, W)

    # SE conv taps, flattened so each 3x3 conv is ONE matmul:
    #   wa_flat rows [k*Cr:(k+1)*Cr] = tap k of conv1 (Cr, C)
    #   wb_flat cols [k*Cr:(k+1)*Cr] = tap k of conv2 (C, Cr)
    wa_flat = jnp.transpose(params["se_conv1_w"], (2, 3, 0, 1)).reshape(9 * Cr, C)
    wb9 = jnp.transpose(params["se_conv2_w"], (2, 3, 0, 1)).reshape(9, C, Cr)
    wb_flat = jnp.transpose(wb9, (1, 0, 2)).reshape(C, 9 * Cr)
    sam_w = params["sam_conv1_w"].reshape(1, C)

    bn_scale = params["bn_gamma"] / jnp.sqrt(params["bn_var"] + BN_EPS)
    wout = params["out_conv_w"].reshape(C, 2 * C) * bn_scale[:, None]
    wo_cau = wout[:, :C]                            # applies to CAU_out
    wo_sau = wout[:, C:]                            # applies to SAU_out
    shift = ((params["out_conv_b"] - params["bn_mean"]) * bn_scale
             + params["bn_beta"]).reshape(C, 1)

    scal = jnp.stack([
        params["sam_conv1_b"][0],
        params["sig_conv1_w"][0, 0, 0, 0],          # weight on avg_out (cat ch 0)
        params["sig_conv1_w"][0, 1, 0, 0],          # weight on conv_out (cat ch 1)
        params["sig_conv1_b"][0],
        params["sig_conv2_w"][0, 0, 0, 0],
        params["sig_conv2_b"][0],
    ]).astype(jnp.float32)

    kernel = _make_ssb_kernel(shifts, Cr, Bt)

    out = pl.pallas_call(
        kernel,
        grid=(B // Bt,),
        in_specs=[
            pl.BlockSpec((Bt, C, HW), lambda i: (i, 0, 0)),         # x
            pl.BlockSpec((9, HW), lambda i: (0, 0)),                # boundary masks
            pl.BlockSpec((Cr, C), lambda i: (0, 0)),                # SE fc1
            pl.BlockSpec((C, Cr), lambda i: (0, 0)),                # SE fc2
            pl.BlockSpec((9 * Cr, C), lambda i: (0, 0)),            # SE conv1 taps
            pl.BlockSpec((C, 9 * Cr), lambda i: (0, 0)),            # SE conv2 taps
            pl.BlockSpec((1, C), lambda i: (0, 0)),                 # SAM conv_1 w
            pl.BlockSpec((C, C), lambda i: (0, 0)),                 # out conv, CAU half
            pl.BlockSpec((C, C), lambda i: (0, 0)),                 # out conv, SAU half
            pl.BlockSpec((C, 1), lambda i: (0, 0)),                 # folded bias+BN shift
            pl.BlockSpec(memory_space=pltpu.MemorySpace.SMEM),      # scalars (6,)
        ],
        out_specs=pl.BlockSpec((Bt, C, HW), lambda i: (i, 0, 0)),
        out_shape=jax.ShapeDtypeStruct((B, C, HW), jnp.float32),
        compiler_params=pltpu.CompilerParams(
            dimension_semantics=("parallel",),
        ),
    )(x_flat, masks, params["se_fc1_w"], params["se_fc2_w"], wa_flat, wb_flat,
      sam_w, wo_cau, wo_sau, shift, scal)

    return out.reshape(B, C, H, W)                  # (B, C, HW) -> NCHW: free


# ---------------------------- pure-JAX reference ---------------------------- #

def _conv2d(x, w, b=None, padding="VALID"):
    out = jax.lax.conv_general_dilated(
        x, w, window_strides=(1, 1), padding=padding,
        dimension_numbers=("NCHW", "OIHW", "NCHW"))
    if b is not None:
        out = out + b[None, :, None, None]
    return out


def reference(x, p):
    # SELayer (CAU)
    y = x.mean(axis=(2, 3))                                         # (B, C)
    h = jax.nn.relu(y @ p["se_fc1_w"].T)                            # (B, Cr)
    se_y = (h @ p["se_fc2_w"].T)[:, :, None, None]                  # (B, C, 1, 1)
    y1 = _conv2d(jax.nn.relu(_conv2d(x, p["se_conv1_w"], padding="SAME")),
                 p["se_conv2_w"], padding="SAME")
    cau = x * jax.nn.sigmoid(se_y * y1)
    # SAM_cat (SAU)
    conv_out = _conv2d(x, p["sam_conv1_w"], p["sam_conv1_b"])
    avg_out = x.mean(axis=1, keepdims=True)
    yy = jnp.concatenate([avg_out, conv_out], axis=1)
    t = jax.nn.relu(_conv2d(yy, p["sig_conv1_w"], p["sig_conv1_b"]))
    t = _conv2d(t, p["sig_conv2_w"], p["sig_conv2_b"])
    sau = x * jax.nn.sigmoid(t)
    # conv_out: 1x1 conv + BN (eval) + ReLU
    cat = jnp.concatenate([cau, sau], axis=1)
    z = _conv2d(cat, p["out_conv_w"], p["out_conv_b"])
    z = ((z - p["bn_mean"][None, :, None, None])
         / jnp.sqrt(p["bn_var"] + BN_EPS)[None, :, None, None]
         * p["bn_gamma"][None, :, None, None]
         + p["bn_beta"][None, :, None, None])
    return jax.nn.relu(z)


# --------------------------------- main ------------------------------------ #

if __name__ == "__main__":
    # SELayer uses reduction=16, so channels must be >= 16.
    B, C, H, W = 2, 32, 16, 16
    r = 16
    Cr = C // r

    key = jax.random.PRNGKey(0)
    ks = jax.random.split(key, 17)
    params = {
        "se_fc1_w": jax.random.normal(ks[0], (Cr, C), jnp.float32) / math.sqrt(C),
        "se_fc2_w": jax.random.normal(ks[1], (C, Cr), jnp.float32) / math.sqrt(Cr),
        "se_conv1_w": jax.random.normal(ks[2], (Cr, C, 3, 3), jnp.float32) / math.sqrt(9 * C),
        "se_conv2_w": jax.random.normal(ks[3], (C, Cr, 3, 3), jnp.float32) / math.sqrt(9 * Cr),
        "sam_conv1_w": jax.random.normal(ks[4], (1, C, 1, 1), jnp.float32) / math.sqrt(C),
        "sam_conv1_b": 0.1 * jax.random.normal(ks[5], (1,), jnp.float32),
        "sig_conv1_w": jax.random.normal(ks[6], (1, 2, 1, 1), jnp.float32),
        "sig_conv1_b": 0.1 * jax.random.normal(ks[7], (1,), jnp.float32),
        "sig_conv2_w": jax.random.normal(ks[8], (1, 1, 1, 1), jnp.float32),
        "sig_conv2_b": 0.1 * jax.random.normal(ks[9], (1,), jnp.float32),
        "out_conv_w": jax.random.normal(ks[10], (C, 2 * C, 1, 1), jnp.float32) / math.sqrt(2 * C),
        "out_conv_b": 0.1 * jax.random.normal(ks[11], (C,), jnp.float32),
        "bn_gamma": 1.0 + 0.1 * jax.random.normal(ks[12], (C,), jnp.float32),
        "bn_beta": 0.1 * jax.random.normal(ks[13], (C,), jnp.float32),
        "bn_mean": 0.1 * jax.random.normal(ks[14], (C,), jnp.float32),
        "bn_var": jax.random.uniform(ks[15], (C,), jnp.float32, minval=0.5, maxval=1.5),
    }
    x = jax.random.normal(ks[16], (B, C, H, W), jnp.float32)

    out = jax.block_until_ready(ssb_forward(x, params))
    ref = jax.block_until_ready(reference(x, params))

    assert out.shape == (B, C, H, W), out.shape
    assert jnp.allclose(out, ref, rtol=2e-2, atol=2e-2), (
        float(jnp.max(jnp.abs(out - ref)))
    )
    print("KERNEL_OK")
</pallas_src>

<mosaic_0001>
module attributes {stable_mosaic.version = 11 : i64} {
  func.func @kernel(%arg0: i32, %arg1: memref<1x32x256xf32, #tpu.memory_space<vmem>>, %arg2: memref<9x256xf32, #tpu.memory_space<vmem>>, %arg3: memref<2x32xf32, #tpu.memory_space<vmem>>, %arg4: memref<32x2xf32, #tpu.memory_space<vmem>>, %arg5: memref<18x32xf32, #tpu.memory_space<vmem>>, %arg6: memref<32x18xf32, #tpu.memory_space<vmem>>, %arg7: memref<1x32xf32, #tpu.memory_space<vmem>>, %arg8: memref<32x32xf32, #tpu.memory_space<vmem>>, %arg9: memref<32x32xf32, #tpu.memory_space<vmem>>, %arg10: memref<32x1xf32, #tpu.memory_space<vmem>>, %arg11: memref<6xf32, #tpu.memory_space<smem>>, %arg12: memref<1x32x256xf32, #tpu.memory_space<vmem>>) attributes {dimension_semantics = [#tpu.dimension_semantics<parallel>], iteration_bounds = array<i64: 2>, scalar_prefetch = 0 : i64, scratch_operands = 0 : i64, tpu.core_type = #tpu.core_type<tc>, window_params = [{transform_indices = @transform_0, window_bounds = array<i64: 1, 32, 256>}, {pipeline_mode = #tpu.pipeline_mode<synchronous>, transform_indices = @transform_1, window_bounds = array<i64: 9, 256>}, {pipeline_mode = #tpu.pipeline_mode<synchronous>, transform_indices = @transform_2, window_bounds = array<i64: 2, 32>}, {pipeline_mode = #tpu.pipeline_mode<synchronous>, transform_indices = @transform_3, window_bounds = array<i64: 32, 2>}, {pipeline_mode = #tpu.pipeline_mode<synchronous>, transform_indices = @transform_4, window_bounds = array<i64: 18, 32>}, {pipeline_mode = #tpu.pipeline_mode<synchronous>, transform_indices = @transform_5, window_bounds = array<i64: 32, 18>}, {pipeline_mode = #tpu.pipeline_mode<synchronous>, transform_indices = @transform_6, window_bounds = array<i64: 1, 32>}, {pipeline_mode = #tpu.pipeline_mode<synchronous>, transform_indices = @transform_7, window_bounds = array<i64: 32, 32>}, {pipeline_mode = #tpu.pipeline_mode<synchronous>, transform_indices = @transform_8, window_bounds = array<i64: 32, 32>}, {pipeline_mode = #tpu.pipeline_mode<synchronous>, transform_indices = @transform_9, window_bounds = array<i64: 32, 1>}, {transform_indices = @transform_10, window_bounds = array<i64: 6>}, {transform_indices = @transform_11, window_bounds = array<i64: 1, 32, 256>}]} {
    %c0 = arith.constant 0 : index
    %c0_0 = arith.constant 0 : index
    %c0_1 = arith.constant 0 : index
    %0 = vector.load %arg1[%c0, %c0_0, %c0_1] : memref<1x32x256xf32, #tpu.memory_space<vmem>>, vector<1x32x256xf32>
    %1 = vector.shape_cast %0 : vector<1x32x256xf32> to vector<32x256xf32>
    %c0_2 = arith.constant 0 : index
    %c0_3 = arith.constant 0 : index
    %2 = vector.load %arg7[%c0_2, %c0_3] : memref<1x32xf32, #tpu.memory_space<vmem>>, vector<1x32xf32>
    %cst = arith.constant dense<0.000000e+00> : vector<1x256xf32>
    %3 = tpu.matmul %2, %1, %cst {dimension_numbers = #tpu.dot_dimension_numbers<[1], [0], [0], [1], [0, 0, 1, 1], [], []>} : vector<1x32xf32>, vector<32x256xf32>, vector<1x256xf32> -> vector<1x256xf32>
    %c0_4 = arith.constant 0 : index
    %4 = memref.load %arg11[%c0_4] : memref<6xf32, #tpu.memory_space<smem>>
    %5 = vector.broadcast %4 : f32 to vector<1x256xf32>
    %6 = arith.addf %3, %5 : vector<1x256xf32>
    %cst_5 = arith.constant dense<0.000000e+00> : vector<256xf32>
    %7 = vector.multi_reduction <add>, %1, %cst_5 [0] : vector<32x256xf32> to vector<256xf32>
    %8 = vector.shape_cast %7 : vector<256xf32> to vector<1x256xf32>
    %cst_6 = arith.constant 3.200000e+01 : f32
    %9 = vector.broadcast %cst_6 : f32 to vector<1x256xf32>
    %10 = arith.divf %8, %9 : vector<1x256xf32>
    %c1 = arith.constant 1 : index
    %11 = memref.load %arg11[%c1] : memref<6xf32, #tpu.memory_space<smem>>
    %12 = vector.broadcast %11 : f32 to vector<1x256xf32>
    %13 = arith.mulf %12, %10 : vector<1x256xf32>
    %c2 = arith.constant 2 : index
    %14 = memref.load %arg11[%c2] : memref<6xf32, #tpu.memory_space<smem>>
    %15 = vector.broadcast %14 : f32 to vector<1x256xf32>
    %16 = arith.mulf %15, %6 : vector<1x256xf32>
    %17 = arith.addf %13, %16 : vector<1x256xf32>
    %c3 = arith.constant 3 : index
    %18 = memref.load %arg11[%c3] : memref<6xf32, #tpu.memory_space<smem>>
    %19 = vector.broadcast %18 : f32 to vector<1x256xf32>
    %20 = arith.addf %17, %19 : vector<1x256xf32>
    %cst_7 = arith.constant 0.000000e+00 : f32
    %21 = vector.broadcast %cst_7 : f32 to vector<1x256xf32>
    %22 = arith.maximumf %20, %21 : vector<1x256xf32>
    %c4 = arith.constant 4 : index
    %23 = memref.load %arg11[%c4] : memref<6xf32, #tpu.memory_space<smem>>
    %24 = vector.broadcast %23 : f32 to vector<1x256xf32>
    %25 = arith.mulf %24, %22 : vector<1x256xf32>
    %c5 = arith.constant 5 : index
    %26 = memref.load %arg11[%c5] : memref<6xf32, #tpu.memory_space<smem>>
    %27 = vector.broadcast %26 : f32 to vector<1x256xf32>
    %28 = arith.addf %25, %27 : vector<1x256xf32>
    %29 = arith.negf %28 : vector<1x256xf32>
    %30 = math.exp %29 : vector<1x256xf32>
    %cst_8 = arith.constant 1.000000e+00 : f32
    %31 = vector.broadcast %cst_8 : f32 to vector<1x256xf32>
    %32 = arith.addf %31, %30 : vector<1x256xf32>
    %33 = arith.divf %31, %32 : vector<1x256xf32>
    %34 = vector.broadcast %33 : vector<1x256xf32> to vector<32x256xf32>
    %35 = arith.mulf %1, %34 : vector<32x256xf32>
    %c0_9 = arith.constant 0 : index
    %c0_10 = arith.constant 0 : index
    %36 = vector.load %arg9[%c0_9, %c0_10] : memref<32x32xf32, #tpu.memory_space<vmem>>, vector<32x32xf32>
    %cst_11 = arith.constant dense<0.000000e+00> : vector<32x256xf32>
    %37 = tpu.matmul %36, %35, %cst_11 {dimension_numbers = #tpu.dot_dimension_numbers<[1], [0], [0], [1], [0, 0, 1, 1], [], []>} : vector<32x32xf32>, vector<32x256xf32>, vector<32x256xf32> -> vector<32x256xf32>
    %c0_12 = arith.constant 0 : index
    %c0_13 = arith.constant 0 : index
    %38 = vector.load %arg10[%c0_12, %c0_13] : memref<32x1xf32, #tpu.memory_space<vmem>>, vector<32x1xf32>
    %39 = vector.broadcast %38 : vector<32x1xf32> to vector<32x256xf32>
    %40 = arith.addf %37, %39 : vector<32x256xf32>
    %cst_14 = arith.constant dense<0.000000e+00> : vector<32xf32>
    %41 = vector.multi_reduction <add>, %1, %cst_14 [1] : vector<32x256xf32> to vector<32xf32>
    %42 = vector.shape_cast %41 : vector<32xf32> to vector<32x1xf32>
    %cst_15 = arith.constant 2.560000e+02 : f32
    %43 = vector.broadcast %cst_15 : f32 to vector<32x1xf32>
    %44 = arith.divf %42, %43 : vector<32x1xf32>
    %c0_16 = arith.constant 0 : index
    %c0_17 = arith.constant 0 : index
    %45 = vector.load %arg3[%c0_16, %c0_17] : memref<2x32xf32, #tpu.memory_space<vmem>>, vector<2x32xf32>
    %cst_18 = arith.constant dense<0.000000e+00> : vector<2x1xf32>
    %46 = tpu.matmul %45, %44, %cst_18 {dimension_numbers = #tpu.dot_dimension_numbers<[1], [0], [0], [1], [0, 0, 1, 1], [], []>} : vector<2x32xf32>, vector<32x1xf32>, vector<2x1xf32> -> vector<2x1xf32>
    %cst_19 = arith.constant 0.000000e+00 : f32
    %47 = vector.broadcast %cst_19 : f32 to vector<2x1xf32>
    %48 = arith.maximumf %46, %47 : vector<2x1xf32>
    %c0_20 = arith.constant 0 : index
    %c0_21 = arith.constant 0 : index
    %49 = vector.load %arg4[%c0_20, %c0_21] : memref<32x2xf32, #tpu.memory_space<vmem>>, vector<32x2xf32>
    %cst_22 = arith.constant dense<0.000000e+00> : vector<32x1xf32>
    %50 = tpu.matmul %49, %48, %cst_22 {dimension_numbers = #tpu.dot_dimension_numbers<[1], [0], [0], [1], [0, 0, 1, 1], [], []>} : vector<32x2xf32>, vector<2x1xf32>, vector<32x1xf32> -> vector<32x1xf32>
    %c0_23 = arith.constant 0 : index
    %c0_24 = arith.constant 0 : index
    %51 = vector.load %arg5[%c0_23, %c0_24] : memref<18x32xf32, #tpu.memory_space<vmem>>, vector<18x32xf32>
    %cst_25 = arith.constant dense<0.000000e+00> : vector<18x256xf32>
    %52 = tpu.matmul %51, %1, %cst_25 {dimension_numbers = #tpu.dot_dimension_numbers<[1], [0], [0], [1], [0, 0, 1, 1], [], []>} : vector<18x32xf32>, vector<32x256xf32>, vector<18x256xf32> -> vector<18x256xf32>
    %53 = vector.extract_strided_slice %52 {offsets = [0, 0], sizes = [2, 256], strides = [1, 1]} : vector<18x256xf32> to vector<2x256xf32>
    %c17_i32 = arith.constant 17 : i32
    %54 = tpu.dynamic_rotate %53 by %c17_i32 dim 1 : vector<2x256xf32>, i32 -> vector<2x256xf32>
    %c0_26 = arith.constant 0 : index
    %c0_27 = arith.constant 0 : index
    %55 = vector.load %arg2[%c0_26, %c0_27] : memref<9x256xf32, #tpu.memory_space<vmem>>, vector<1x256xf32>
    %56 = vector.broadcast %55 : vector<1x256xf32> to vector<2x256xf32>
    %57 = arith.mulf %56, %54 : vector<2x256xf32>
    %58 = vector.extract_strided_slice %52 {offsets = [2, 0], sizes = [2, 256], strides = [1, 1]} : vector<18x256xf32> to vector<2x256xf32>
    %c16_i32 = arith.constant 16 : i32
    %59 = tpu.dynamic_rotate %58 by %c16_i32 dim 1 : vector<2x256xf32>, i32 -> vector<2x256xf32>
    %c1_28 = arith.constant 1 : index
    %c0_29 = arith.constant 0 : index
    %60 = vector.load %arg2[%c1_28, %c0_29] : memref<9x256xf32, #tpu.memory_space<vmem>>, vector<1x256xf32>
    %61 = vector.broadcast %60 : vector<1x256xf32> to vector<2x256xf32>
    %62 = arith.mulf %61, %59 : vector<2x256xf32>
    %63 = arith.addf %57, %62 : vector<2x256xf32>
    %64 = vector.extract_strided_slice %52 {offsets = [4, 0], sizes = [2, 256], strides = [1, 1]} : vector<18x256xf32> to vector<2x256xf32>
    %c15_i32 = arith.constant 15 : i32
    %65 = tpu.dynamic_rotate %64 by %c15_i32 dim 1 : vector<2x256xf32>, i32 -> vector<2x256xf32>
    %c2_30 = arith.constant 2 : index
    %c0_31 = arith.constant 0 : index
    %66 = vector.load %arg2[%c2_30, %c0_31] : memref<9x256xf32, #tpu.memory_space<vmem>>, vector<1x256xf32>
    %67 = vector.broadcast %66 : vector<1x256xf32> to vector<2x256xf32>
    %68 = arith.mulf %67, %65 : vector<2x256xf32>
    %69 = arith.addf %63, %68 : vector<2x256xf32>
    %70 = vector.extract_strided_slice %52 {offsets = [6, 0], sizes = [2, 256], strides = [1, 1]} : vector<18x256xf32> to vector<2x256xf32>
    %c1_i32 = arith.constant 1 : i32
    %71 = tpu.dynamic_rotate %70 by %c1_i32 dim 1 : vector<2x256xf32>, i32 -> vector<2x256xf32>
    %c3_32 = arith.constant 3 : index
    %c0_33 = arith.constant 0 : index
    %72 = vector.load %arg2[%c3_32, %c0_33] : memref<9x256xf32, #tpu.memory_space<vmem>>, vector<1x256xf32>
    %73 = vector.broadcast %72 : vector<1x256xf32> to vector<2x256xf32>
    %74 = arith.mulf %73, %71 : vector<2x256xf32>
    %75 = arith.addf %69, %74 : vector<2x256xf32>
    %76 = vector.extract_strided_slice %52 {offsets = [8, 0], sizes = [2, 256], strides = [1, 1]} : vector<18x256xf32> to vector<2x256xf32>
    %c4_34 = arith.constant 4 : index
    %c0_35 = arith.constant 0 : index
    %77 = vector.load %arg2[%c4_34, %c0_35] : memref<9x256xf32, #tpu.memory_space<vmem>>, vector<1x256xf32>
    %78 = vector.broadcast %77 : vector<1x256xf32> to vector<2x256xf32>
    %79 = arith.mulf %78, %76 : vector<2x256xf32>
    %80 = arith.addf %75, %79 : vector<2x256xf32>
    %81 = vector.extract_strided_slice %52 {offsets = [10, 0], sizes = [2, 256], strides = [1, 1]} : vector<18x256xf32> to vector<2x256xf32>
    %c255_i32 = arith.constant 255 : i32
    %82 = tpu.dynamic_rotate %81 by %c255_i32 dim 1 : vector<2x256xf32>, i32 -> vector<2x256xf32>
    %c5_36 = arith.constant 5 : index
    %c0_37 = arith.constant 0 : index
    %83 = vector.load %arg2[%c5_36, %c0_37] : memref<9x256xf32, #tpu.memory_space<vmem>>, vector<1x256xf32>
    %84 = vector.broadcast %83 : vector<1x256xf32> to vector<2x256xf32>
    %85 = arith.mulf %84, %82 : vector<2x256xf32>
    %86 = arith.addf %80, %85 : vector<2x256xf32>
    %87 = vector.extract_strided_slice %52 {offsets = [12, 0], sizes = [2, 256], strides = [1, 1]} : vector<18x256xf32> to vector<2x256xf32>
    %c241_i32 = arith.constant 241 : i32
    %88 = tpu.dynamic_rotate %87 by %c241_i32 dim 1 : vector<2x256xf32>, i32 -> vector<2x256xf32>
    %c6 = arith.constant 6 : index
    %c0_38 = arith.constant 0 : index
    %89 = vector.load %arg2[%c6, %c0_38] : memref<9x256xf32, #tpu.memory_space<vmem>>, vector<1x256xf32>
    %90 = vector.broadcast %89 : vector<1x256xf32> to vector<2x256xf32>
    %91 = arith.mulf %90, %88 : vector<2x256xf32>
    %92 = arith.addf %86, %91 : vector<2x256xf32>
    %93 = vector.extract_strided_slice %52 {offsets = [14, 0], sizes = [2, 256], strides = [1, 1]} : vector<18x256xf32> to vector<2x256xf32>
    %c240_i32 = arith.constant 240 : i32
    %94 = tpu.dynamic_rotate %93 by %c240_i32 dim 1 : vector<2x256xf32>, i32 -> vector<2x256xf32>
    %c7 = arith.constant 7 : index
    %c0_39 = arith.constant 0 : index
    %95 = vector.load %arg2[%c7, %c0_39] : memref<9x256xf32, #tpu.memory_space<vmem>>, vector<1x256xf32>
    %96 = vector.broadcast %95 : vector<1x256xf32> to vector<2x256xf32>
    %97 = arith.mulf %96, %94 : vector<2x256xf32>
    %98 = arith.addf %92, %97 : vector<2x256xf32>
    %99 = vector.extract_strided_slice %52 {offsets = [16, 0], sizes = [2, 256], strides = [1, 1]} : vector<18x256xf32> to vector<2x256xf32>
    %c239_i32 = arith.constant 239 : i32
    %100 = tpu.dynamic_rotate %99 by %c239_i32 dim 1 : vector<2x256xf32>, i32 -> vector<2x256xf32>
    %c8 = arith.constant 8 : index
    %c0_40 = arith.constant 0 : index
    %101 = vector.load %arg2[%c8, %c0_40] : memref<9x256xf32, #tpu.memory_space<vmem>>, vector<1x256xf32>
    %102 = vector.broadcast %101 : vector<1x256xf32> to vector<2x256xf32>
    %103 = arith.mulf %102, %100 : vector<2x256xf32>
    %104 = arith.addf %98, %103 : vector<2x256xf32>
    %cst_41 = arith.constant 0.000000e+00 : f32
    %105 = vector.broadcast %cst_41 : f32 to vector<2x256xf32>
    %106 = arith.maximumf %104, %105 : vector<2x256xf32>
    %c17_i32_42 = arith.constant 17 : i32
    %107 = tpu.dynamic_rotate %106 by %c17_i32_42 dim 1 : vector<2x256xf32>, i32 -> vector<2x256xf32>
    %c0_43 = arith.constant 0 : index
    %c0_44 = arith.constant 0 : index
    %108 = vector.load %arg2[%c0_43, %c0_44] : memref<9x256xf32, #tpu.memory_space<vmem>>, vector<1x256xf32>
    %109 = vector.broadcast %108 : vector<1x256xf32> to vector<2x256xf32>
    %110 = arith.mulf %109, %107 : vector<2x256xf32>
    %c16_i32_45 = arith.constant 16 : i32
    %111 = tpu.dynamic_rotate %106 by %c16_i32_45 dim 1 : vector<2x256xf32>, i32 -> vector<2x256xf32>
    %c1_46 = arith.constant 1 : index
    %c0_47 = arith.constant 0 : index
    %112 = vector.load %arg2[%c1_46, %c0_47] : memref<9x256xf32, #tpu.memory_space<vmem>>, vector<1x256xf32>
    %113 = vector.broadcast %112 : vector<1x256xf32> to vector<2x256xf32>
    %114 = arith.mulf %113, %111 : vector<2x256xf32>
    %c15_i32_48 = arith.constant 15 : i32
    %115 = tpu.dynamic_rotate %106 by %c15_i32_48 dim 1 : vector<2x256xf32>, i32 -> vector<2x256xf32>
    %c2_49 = arith.constant 2 : index
    %c0_50 = arith.constant 0 : index
    %116 = vector.load %arg2[%c2_49, %c0_50] : memref<9x256xf32, #tpu.memory_space<vmem>>, vector<1x256xf32>
    %117 = vector.broadcast %116 : vector<1x256xf32> to vector<2x256xf32>
    %118 = arith.mulf %117, %115 : vector<2x256xf32>
    %c1_i32_51 = arith.constant 1 : i32
    %119 = tpu.dynamic_rotate %106 by %c1_i32_51 dim 1 : vector<2x256xf32>, i32 -> vector<2x256xf32>
    %c3_52 = arith.constant 3 : index
    %c0_53 = arith.constant 0 : index
    %120 = vector.load %arg2[%c3_52, %c0_53] : memref<9x256xf32, #tpu.memory_space<vmem>>, vector<1x256xf32>
    %121 = vector.broadcast %120 : vector<1x256xf32> to vector<2x256xf32>
    %122 = arith.mulf %121, %119 : vector<2x256xf32>
    %c4_54 = arith.constant 4 : index
    %c0_55 = arith.constant 0 : index
    %123 = vector.load %arg2[%c4_54, %c0_55] : memref<9x256xf32, #tpu.memory_space<vmem>>, vector<1x256xf32>
    %124 = vector.broadcast %123 : vector<1x256xf32> to vector<2x256xf32>
    %125 = arith.mulf %124, %106 : vector<2x256xf32>
    %c255_i32_56 = arith.constant 255 : i32
    %126 = tpu.dynamic_rotate %106 by %c255_i32_56 dim 1 : vector<2x256xf32>, i32 -> vector<2x256xf32>
    %c5_57 = arith.constant 5 : index
    %c0_58 = arith.constant 0 : index
    %127 = vector.load %arg2[%c5_57, %c0_58] : memref<9x256xf32, #tpu.memory_space<vmem>>, vector<1x256xf32>
    %128 = vector.broadcast %127 : vector<1x256xf32> to vector<2x256xf32>
    %129 = arith.mulf %128, %126 : vector<2x256xf32>
    %c241_i32_59 = arith.constant 241 : i32
    %130 = tpu.dynamic_rotate %106 by %c241_i32_59 dim 1 : vector<2x256xf32>, i32 -> vector<2x256xf32>
    %c6_60 = arith.constant 6 : index
    %c0_61 = arith.constant 0 : index
    %131 = vector.load %arg2[%c6_60, %c0_61] : memref<9x256xf32, #tpu.memory_space<vmem>>, vector<1x256xf32>
    %132 = vector.broadcast %131 : vector<1x256xf32> to vector<2x256xf32>
    %133 = arith.mulf %132, %130 : vector<2x256xf32>
    %c240_i32_62 = arith.constant 240 : i32
    %134 = tpu.dynamic_rotate %106 by %c240_i32_62 dim 1 : vector<2x256xf32>, i32 -> vector<2x256xf32>
    %c7_63 = arith.constant 7 : index
    %c0_64 = arith.constant 0 : index
    %135 = vector.load %arg2[%c7_63, %c0_64] : memref<9x256xf32, #tpu.memory_space<vmem>>, vector<1x256xf32>
    %136 = vector.broadcast %135 : vector<1x256xf32> to vector<2x256xf32>
    %137 = arith.mulf %136, %134 : vector<2x256xf32>
    %c239_i32_65 = arith.constant 239 : i32
    %138 = tpu.dynamic_rotate %106 by %c239_i32_65 dim 1 : vector<2x256xf32>, i32 -> vector<2x256xf32>
    %c8_66 = arith.constant 8 : index
    %c0_67 = arith.constant 0 : index
    %139 = vector.load %arg2[%c8_66, %c0_67] : memref<9x256xf32, #tpu.memory_space<vmem>>, vector<1x256xf32>
    %140 = vector.broadcast %139 : vector<1x256xf32> to vector<2x256xf32>
    %141 = arith.mulf %140, %138 : vector<2x256xf32>
    %142 = tpu.concatenate %110, %114, %118, %122, %125, %129, %133, %137, %141 in 0 : vector<2x256xf32>, vector<2x256xf32>, vector<2x256xf32>, vector<2x256xf32>, vector<2x256xf32>, vector<2x256xf32>, vector<2x256xf32>, vector<2x256xf32>, vector<2x256xf32> -> vector<18x256xf32>
    %c0_68 = arith.constant 0 : index
    %c0_69 = arith.constant 0 : index
    %143 = vector.load %arg6[%c0_68, %c0_69] : memref<32x18xf32, #tpu.memory_space<vmem>>, vector<32x18xf32>
    %cst_70 = arith.constant dense<0.000000e+00> : vector<32x256xf32>
    %144 = tpu.matmul %143, %142, %cst_70 {dimension_numbers = #tpu.dot_dimension_numbers<[1], [0], [0], [1], [0, 0, 1, 1], [], []>} : vector<32x18xf32>, vector<18x256xf32>, vector<32x256xf32> -> vector<32x256xf32>
    %145 = vector.broadcast %50 : vector<32x1xf32> to vector<32x256xf32>
    %146 = arith.mulf %145, %144 : vector<32x256xf32>
    %147 = arith.negf %146 : vector<32x256xf32>
    %148 = math.exp %147 : vector<32x256xf32>
    %cst_71 = arith.constant 1.000000e+00 : f32
    %149 = vector.broadcast %cst_71 : f32 to vector<32x256xf32>
    %150 = arith.addf %149, %148 : vector<32x256xf32>
    %151 = arith.divf %149, %150 : vector<32x256xf32>
    %152 = arith.mulf %1, %151 : vector<32x256xf32>
    %c0_72 = arith.constant 0 : index
    %c0_73 = arith.constant 0 : index
    %153 = vector.load %arg8[%c0_72, %c0_73] : memref<32x32xf32, #tpu.memory_space<vmem>>, vector<32x32xf32>
    %cst_74 = arith.constant dense<0.000000e+00> : vector<32x256xf32>
    %154 = tpu.matmul %153, %152, %cst_74 {dimension_numbers = #tpu.dot_dimension_numbers<[1], [0], [0], [1], [0, 0, 1, 1], [], []>} : vector<32x32xf32>, vector<32x256xf32>, vector<32x256xf32> -> vector<32x256xf32>
    %155 = arith.addf %40, %154 : vector<32x256xf32>
    %cst_75 = arith.constant 0.000000e+00 : f32
    %156 = vector.broadcast %cst_75 : f32 to vector<32x256xf32>
    %157 = arith.maximumf %155, %156 : vector<32x256xf32>
    %c0_76 = arith.constant 0 : index
    %c0_77 = arith.constant 0 : index
    %c0_78 = arith.constant 0 : index
    %158 = vector.load %arg12[%c0_76, %c0_77, %c0_78] : memref<1x32x256xf32, #tpu.memory_space<vmem>>, vector<1x32x256xf32>
    %159 = vector.shape_cast %158 : vector<1x32x256xf32> to vector<32x256xf32>
    %160 = vector.shape_cast %157 : vector<32x256xf32> to vector<1x32x256xf32>
    tpu.vector_store %arg12[%c0_76, %c0_77, %c0_78], %160 {strides = array<i32>} : memref<1x32x256xf32, #tpu.memory_space<vmem>>, vector<1x32x256xf32>,
    return
  }
  func.func @transform_0(%arg0: i32) -> (i32, i32, i32) {
    %c0_i32 = arith.constant 0 : i32
    %c0_i32_0 = arith.constant 0 : i32
    %c0_i32_1 = arith.constant 0 : i32
    return %arg0, %c0_i32, %c0_i32_0 : i32, i32, i32
  }
  func.func @transform_1(%arg0: i32) -> (i32, i32) {
    %c0_i32 = arith.constant 0 : i32
    %c0_i32_0 = arith.constant 0 : i32
    %c0_i32_1 = arith.constant 0 : i32
    return %c0_i32, %c0_i32_0 : i32, i32
  }
  func.func @transform_2(%arg0: i32) -> (i32, i32) {
    %c0_i32 = arith.constant 0 : i32
    %c0_i32_0 = arith.constant 0 : i32
    %c0_i32_1 = arith.constant 0 : i32
    return %c0_i32, %c0_i32_0 : i32, i32
  }
  func.func @transform_3(%arg0: i32) -> (i32, i32) {
    %c0_i32 = arith.constant 0 : i32
    %c0_i32_0 = arith.constant 0 : i32
    %c0_i32_1 = arith.constant 0 : i32
    return %c0_i32, %c0_i32_0 : i32, i32
  }
  func.func @transform_4(%arg0: i32) -> (i32, i32) {
    %c0_i32 = arith.constant 0 : i32
    %c0_i32_0 = arith.constant 0 : i32
    %c0_i32_1 = arith.constant 0 : i32
    return %c0_i32, %c0_i32_0 : i32, i32
  }
  func.func @transform_5(%arg0: i32) -> (i32, i32) {
    %c0_i32 = arith.constant 0 : i32
    %c0_i32_0 = arith.constant 0 : i32
    %c0_i32_1 = arith.constant 0 : i32
    return %c0_i32, %c0_i32_0 : i32, i32
  }
  func.func @transform_6(%arg0: i32) -> (i32, i32) {
    %c0_i32 = arith.constant 0 : i32
    %c0_i32_0 = arith.constant 0 : i32
    %c0_i32_1 = arith.constant 0 : i32
    return %c0_i32, %c0_i32_0 : i32, i32
  }
  func.func @transform_7(%arg0: i32) -> (i32, i32) {
    %c0_i32 = arith.constant 0 : i32
    %c0_i32_0 = arith.constant 0 : i32
    %c0_i32_1 = arith.constant 0 : i32
    return %c0_i32, %c0_i32_0 : i32, i32
  }
  func.func @transform_8(%arg0: i32) -> (i32, i32) {
    %c0_i32 = arith.constant 0 : i32
    %c0_i32_0 = arith.constant 0 : i32
    %c0_i32_1 = arith.constant 0 : i32
    return %c0_i32, %c0_i32_0 : i32, i32
  }
  func.func @transform_9(%arg0: i32) -> (i32, i32) {
    %c0_i32 = arith.constant 0 : i32
    %c0_i32_0 = arith.constant 0 : i32
    %c0_i32_1 = arith.constant 0 : i32
    return %c0_i32, %c0_i32_0 : i32, i32
  }
  func.func @transform_10(%arg0: i32) -> i32 {
    %c0_i32 = arith.constant 0 : i32
    %c0_i32_0 = arith.constant 0 : i32
    return %c0_i32 : i32
  }
  func.func @transform_11(%arg0: i32) -> (i32, i32, i32) {
    %c0_i32 = arith.constant 0 : i32
    %c0_i32_0 = arith.constant 0 : i32
    %c0_i32_1 = arith.constant 0 : i32
    return %arg0, %c0_i32, %c0_i32_0 : i32, i32, i32
  }
}

</mosaic_0001>

<bundles_post_ra>
// kernel: tpu_custom_call.1
= control target key start
LH: loop header
LB: loop body
LE: loop exit
PB: predicated region body
PF: predicated region fallthrough
CT: control target
= control target key end

     0   :  { %s3012_s0 = inlined_call_operand.hbm [shape: f32[2,32,256], index: 0, kind: input, shape index: {}]   ;;  %s3013_s1 = inlined_call_operand.vmem [shape: f32[9,256], index: 1, kind: input, shape index: {}]   ;;  %s3014_s2 = inlined_call_operand.vmem [shape: f32[2,32], index: 2, kind: input, shape index: {}]   ;;  %s3015_s3 = inlined_call_operand.vmem [shape: f32[32,2], index: 3, kind: input, shape index: {}]   ;;  %s3016_s4 = inlined_call_operand.hbm [shape: f32[18,32], index: 4, kind: input, shape index: {}]   ;;  %s3017_s5 = inlined_call_operand.vmem [shape: f32[32,18], index: 5, kind: input, shape index: {}]   ;;  %s3018_s6 = inlined_call_operand.vmem [shape: f32[1,32], index: 6, kind: input, shape index: {}]   ;;  %s3019_s7 = inlined_call_operand.vmem [shape: f32[32,32], index: 7, kind: input, shape index: {}]   ;;  %s3020_s8 = inlined_call_operand.vmem [shape: f32[32,32], index: 8, kind: input, shape index: {}]   ;;  %s3021_s9 = inlined_call_operand.vmem [shape: f32[32,1], index: 9, kind: input, shape index: {}]   ;;  %s3022_s10 = inlined_call_operand.vmem [shape: f32[6], index: 10, kind: input, shape index: {}]   ;;  %s3023_s11 = inlined_call_operand.hbm [shape: f32[2,32,256], index: 11, kind: output, shape index: {}]  }
   0x1   :  { %3034 = sst [smem:[#allocation15_spill]] %s3016_s4 }
   0x2   :  { %3035 = sst [smem:[#allocation16_spill]] %s3022_s10 }
   0x3   :  { %16 = vsyncpa [#allocation3], 0 }
   0x4   :  { %18 = vsyncpa [#allocation3 + $0x1], 0 }
   0x5   :  { %19 = vsyncpa [#allocation7], 0 }
   0x6   :  { %20 = vsyncpa [#allocation5], 0 }
   0x7   :  { %21 = vsyncpa [#allocation4], 0 }
   0x8   :  { %23 = vsyncpa [#allocation4 + $0x1], 0  ;;  %s2325_s17 = smov 0   ;;  %s2327_s18 = smov 0  }
   0x9   :  { %s2329_s19 = smov 0   ;;  %s2331_s20 = smov 0  }
   0xa LB: > { %s2346_s21 = sadd.s32 4294967295, %s2242_s20   ;;  %s1803_s22 = sadd.s32 4294967294, %s2242_s20   ;;  %s2242_s20 = sphi %s2331_s20, %s3062_s20   ;;  %s2238_s19 = sphi %s2329_s19, %s3061_s19   ;;  %s2234_s18 = sphi %s2327_s18, %s3060_s18   ;;  %s2230_s17 = sphi %s2325_s17, %s3059_s17  }
   0xb   : > { %p49_p0 = scmp.ne.s32.totalorder %s2234_s18, %s2230_s17  ;;  %p3024_p1 = scmp.eq.s32.totalorder %s2346_s21, 0 }
   0xc   : > { %p289_p3 = scmp.eq.s32.totalorder %s1803_s22, 1  ;;  %p1804_p5 = scmp.ge.s32.totalorder %s2242_s20, 1 }
   0xd   : > { %p2355_p4 = por %p3024_p1, %p49_p0  ;;  %p296_p7 = scmp.lt.s32.totalorder %s2242_s20, 3 }
   0xe   : > { %p2360_p6 = por %p289_p3, %p49_p0  ;;  %s2244_s26 = smov [#allocation6]  }
   0xf   : > { %s3036_s23 = scalar_select %p2355_p4, 1, 0 }
  0x10   : > { %s3037_s24 = scalar_select %p2360_p6, 1, 0 }
  0x11   : > { %p2365_p8 = pnand %p1804_p5, %p296_p7  ;;  %s317_s27 = sshll.u32 %s2244_s26, 4  ;;  %s318_s27 = int_to_ptr.vmem [resolvable:$true] %s317_s27 }
  0x12   : > { %s3039_s10 = sld [smem:[#allocation16_spill]]  ;;  %s3041_s4 = sld [smem:[#allocation15_spill]] }
  0x13   : > { %s3038_s25 = scalar_select %p2365_p8, 1, 0 }
  0x14   : > { %p1973_p9 = pneg %p2365_p8 }
  0x16   : > { %p2377_p11 = pnand %p1973_p9, %p3024_p1 }
  0x18   : > { %s346_s30 = sshll.u32 %s3039_s10, 4  ;;  %s2095_s15 = scalar_lea.hbm %s3041_s4, 384  ;;  %s2381_s30 = int_to_ptr.vmem [resolvable:$true] %s346_s30 }
  0x19   : > { %p2096_p12 = scmp.ne.s32.totalorder %s3041_s4, %s2095_s15  ;;  %p2097_p13 = pneg %p2377_p11 }
  0x1a   : > { %p2102_p5 = scmp.lt.u32.totalorder %s2095_s15, %s3041_s4 }
  0x1b   : > { %p2098_p0 = pnand %p2097_p13, %p2096_p12 }
  0x1d   : > { %p2099_p3 = pneg %p2098_p0 }
  0x1f   : > { %p2104_p7 = pnand %p2102_p5, %p2099_p3 }
  0x21   : > { %2107 = shalt.err (!%p2104_p7)
}
  0x22   : > { %s2108_s29 = scalar_lea.vmem %s318_s27, 384  ;;  %p2116_p2 = scmp.lt.s32.totalorder %s318_s27, %s318_s27 }
  0x23   : > { %p2109_p9 = scmp.ne.s32.totalorder %s318_s27, %s2108_s29  ;;  %p2117_p6 = scmp.lt.s32.totalorder %s2108_s29, %s2108_s29 }
  0x25   : > { %p2111_p10 = pnand %p2109_p9, %p2097_p13  ;;  %p2118_p4 = por %p2117_p6, %p2116_p2 }
  0x27   : > { %p2112_p1 = pneg %p2111_p10 }
  0x29   : > { %p2119_p8 = pnand %p2118_p4, %p2112_p1 }
  0x2b   : > { %2122 = shalt.err (!%p2119_p8)
}
  0x2c   : > { %s2245_s13 = smov 128   ;;  %s2246_s14 = smov 8  }
  0x2d   : > { %1976 = dma.hbm_to_vmem [thread:$0]  (!%p2377_p11), %s3041_s4, 384, %s318_s27, [#allocation7], %s2245_s13, %s2245_s13, %s2246_s14  }
  0x2e   : > { %s2123_s22 = scalar_lea.vmem %s2381_s30, 16  ;;  %p2131_p1 = scmp.lt.s32.totalorder %s2381_s30, %s2381_s30 }
  0x2f   : > { %p2124_p12 = scmp.ne.s32.totalorder %s2381_s30, %s2123_s22  ;;  %p2132_p4 = scmp.lt.s32.totalorder %s2123_s22, %s2123_s22 }
  0x31   : > { %p2126_p10 = pnand %p2124_p12, %p2097_p13  ;;  %p2133_p6 = por %p2132_p4, %p2131_p1 }
  0x33   : > { %p2127_p2 = pneg %p2126_p10 }
  0x35   : > { %p2134_p8 = pnand %p2133_p6, %p2127_p2 }
  0x37   : > { %2137 = shalt.err (!%p2134_p8)
}
  0x38   : > { %s2247_s26 = smov [#allocation8]   ;;  %s2416_s27 = sadd.s32 1, %s2242_s20  }
  0x39   : > { %1979 = dma.vmem_to_smem (!%p2377_p11), %s2381_s30, 16, %s2247_s26, [#allocation5]  }
  0x3a   : > { %s36_s28 = sadd.s32 1, %s2238_s19  ;;  %s33_s29 = ssub.s32 %s2242_s20, %s2416_s27 }
  0x3b   : > { %p43_p13 = scmp.ne.s32.totalorder %s2238_s19, %s2234_s18  ;;  %p34_p0 = scmp.eq.s32.totalorder %s33_s29, 0 }
  0x3c   : > { %p44_p3 = scmp.eq.s32.totalorder %s2242_s20, 0  ;;  %p3042_p5 = scmp.eq.s32.totalorder %s2346_s21, 1 }
  0x3d   : > { %p1990_p9 = scmp.lt.s32.totalorder %s2242_s20, 2  ;;  %s357_s14 = sand.u32 1, %s2238_s19  }
  0x3e   : > { %p2426_p7 = por %p3042_p5, %p43_p13  ;;  %p45_p12 = por %p44_p3, %p43_p13 }
  0x3f   : > { %s2432_s13 = scalar_select %p34_p0, %s2238_s19, %s36_s28  }
  0x40   : > { %s1808_s15 = sshll.u32 %s357_s14, 6  ;;  %s1868_s30 = sshll.u32 %s2242_s20, 10 }
  0x41   : > { %3044 = sst [smem:[#allocation14_spill]] %s2432_s13  ;;  %s2439_s26 = scalar_lea.hbm %s3012_s0, %s1868_s30 }
  0x42   : > { %s361_s29 = scalar_lea.vmem [#allocation2], %s1808_s15  ;;  %p2443_p11 = pnand %p1990_p9, %p45_p12 }
  0x43   : > { %s368_s4 = sshll.u32 %s361_s29, 4  ;;  %s2447_s10 = scalar_lea.sflag [#allocation3], %s357_s14  ;;  %s2441_s4 = int_to_ptr.vmem [resolvable:$true] %s368_s4 }
  0x44   : > { %s2138_s13 = scalar_lea.hbm %s2439_s26, 1024  ;;  %p2140_p2 = pneg %p2443_p11 }
  0x45   : > { %p2139_p10 = scmp.ne.s32.totalorder %s2439_s26, %s2138_s13  ;;  %s2143_s16 = scalar_lea.hbm %s3012_s0, 2048 }
  0x46   : > { %p2144_p6 = scmp.lt.u32.totalorder %s2439_s26, %s3012_s0  ;;  %p2145_p8 = scmp.lt.u32.totalorder %s2143_s16, %s2138_s13 }
  0x47   : > { %p2141_p1 = pnand %p2140_p2, %p2139_p10  ;;  %p2147_p0 = scmp.lt.u32.totalorder %s2138_s13, %s2439_s26 }
  0x48   : > { %p2146_p13 = por %p2145_p8, %p2144_p6 }
  0x49   : > { %p2142_p4 = pneg %p2141_p1 }
  0x4a   : > { %p2148_p3 = por %p2147_p0, %p2146_p13 }
  0x4c   : > { %p2149_p5 = pnand %p2148_p3, %p2142_p4 }
  0x4e   : > { %2152 = shalt.err (!%p2149_p5)
}
  0x4f   : > { %s2153_s14 = scalar_lea.vmem %s2441_s4, 1024  ;;  %s2248_s15 = smov [#allocation2]  }
  0x50   : > { %p2154_p9 = scmp.ne.s32.totalorder %s2441_s4, %s2153_s14  ;;  %s2158_s30 = sshll.u32 %s2248_s15, 4  ;;  %s2159_s30 = int_to_ptr.vmem [resolvable:$false] %s2158_s30 }
  0x51   : > { %s2160_s22 = scalar_lea.vmem %s2159_s30, 2048  ;;  %p2161_p1 = scmp.lt.s32.totalorder %s2441_s4, %s2159_s30 }
  0x52   : > { %p2156_p12 = pnand %p2154_p9, %p2140_p2  ;;  %p2162_p6 = scmp.lt.s32.totalorder %s2160_s22, %s2153_s14 }
  0x54   : > { %p2157_p10 = pneg %p2156_p12  ;;  %p2163_p8 = por %p2162_p6, %p2161_p1 }
  0x56   : > { %p2164_p13 = pnand %p2163_p8, %p2157_p10 }
  0x58   : > { %2167 = shalt.err (!%p2164_p13)
}
  0x59   : > { %s2249_s13 = smov 256   ;;  %s2250_s16 = smov 16  }
  0x5a   : > { %1983 = dma.hbm_to_vmem [thread:$0]  (!%p2443_p11), %s2439_s26, 1024, %s2441_s4, %s2447_s10, %s2249_s13, %s2249_s13, %s2250_s16  }
  0x5b   : > { %p3046_p2 = scmp.ne.s32.totalorder %s3038_s25, 0 }
  0x5c   : > { %s2478_s29 = sand.u32 (!%p3046_p2), 1, %s2234_s18   ;;  %p3047_p4 = scmp.ne.s32.totalorder (!%p3046_p2), %s3036_s23, 0 }
  0x5d   : > { %380 = sbr.rel (%p3046_p2) target bundleno = 1426 (0x592), region = 64  ;;  %s3027_s14 = sshll.u32 (!%p3046_p2), %s2478_s29, 6 }
  0x5e   : > { %s383_s15 = scalar_lea.sflag (!%p3046_p2), [#allocation3], %s2478_s29  ;;  %s2484_s30 = scalar_lea.vmem (!%p3046_p2), [#allocation2], %s3027_s14 }
  0x64   : > { %2213 = dma.done.wait (%p3047_p4), %s383_s15, 1024  }
  0x65   : > { %2215 = vsyncadd (%p3047_p4), %s383_s15, 4294966272  ;;  %p3048_p11 = scmp.eq.s32.totalorder %s2346_s21, 0 }
  0x67   : > { %2217 = dma.done.wait (%p3048_p11), [#allocation7], 384   ;;  %p3049_p0 = pmov %p3048_p11 }
  0x69   : > { %2219 = vsyncadd (%p3049_p0), [#allocation7], 4294966912  ;;  %p3050_p3 = pmov %p3049_p0 }
  0x6a   : > { %p3051_p5 = pmov %p3049_p0 }
  0x6b   : > { %2221 = dma.done.wait (%p3050_p3), [#allocation5], 16  }
  0x6c   : > { %2223 = vsyncadd (%p3051_p5), [#allocation5], 4294967280 }
  0x6d   : > { %399 = sfence }
  0x6e   : > { %v2499_v0 = vld [vmem:[%s2484_s30 + $0x8] sm:$0xff]  ;;  %v2502_v1 = vld [vmem:[%s2484_s30 + $0x18] sm:$0xff]  ;;  %v2505_v2 = vld [vmem:[%s2484_s30] sm:$0xff]  ;;  %v2251_v7 = vmov 0.0   ;;  %vm445_vm0 = vcmask 261120   ;;  %v2252_v18 = vmov 0.0|0.0  }
  0x6f   : > { %v2509_v3 = vpack.c.bf16 %v2502_v1, %v2499_v0  ;;  %v2512_v4 = vld [vmem:[%s2484_s30 + $0x10] sm:$0xff]  ;;  %v2515_v5 = vld [vmem:[%s2484_s30 + $0x28] sm:$0xff]  ;;  %v2518_v6 = vld [vmem:[%s2484_s30 + $0x38] sm:$0xff]  ;;  %513 = vmatprep.mubr.f32.mxu0 %v2251_v7  ;;  %v722_v8 = vadd.f32 %v2499_v0, %v2505_v2  ;;  %697 = vmatprep.mubr.f32.mxu1 %v2251_v7  ;;  %vm2253_vm1 = vmmov 0   ;;  %v529_v31 = vadd.f32 %v2502_v1, %v2499_v0  ;;  %s443_s26 = sld [smem:[#allocation8]]  ;;  %s1817_s28 = sld [smem:[#allocation8 + $0x1]] }
  0x70   : > { %v2526_v9 = vpack.c.bf16 %v2512_v4, %v2505_v2  ;;  %v2530_v10 = vpack.c.bf16 %v2518_v6, %v2515_v5  ;;  %v2533_v11 = vld [vmem:[%s2484_s30 + $0x20] sm:$0xff]  ;;  %v2536_v12 = vld [vmem:[%s2484_s30 + $0x30] sm:$0xff]  ;;  %v725_v14 = vadd.f32 %v2502_v1, %v2512_v4  ;;  %v520_v30 = vadd.f32 %v2512_v4, %v2505_v2  ;;  %s1818_s22 = sld [smem:[#allocation8 + $0x2]]  ;;  %s1819_s13 = sld [smem:[#allocation8 + $0x3]] }
  0x71   : > { %1900 = vmatprep.subr.bf16.mxu0 %v2509_v3  ;;  %723 = vadd.xlane.f32.xlu0 %v722_v8  ;;  %v728_v13 = vadd.f32 %v2515_v5, %v2533_v11  ;;  %v2546_v15 = vpack.c.bf16 %v2536_v12, %v2533_v11  ;;  %v731_v16 = vadd.f32 %v2518_v6, %v2536_v12  ;;  %v442_v17 = vld [vmem:[%s3018_s6] sm:$0x1]  ;;  %s1820_s16 = sld [smem:[#allocation8 + $0x4]]  ;;  %s1821_s15 = sld [smem:[#allocation8 + $0x5]]  ;;  %vm818_vm2 = vcmask 15360  }
  0x72   : > { %1902 = vmatpush1.bf16.msra.mxu0 %v2526_v9  ;;  %v739_v29 = vld [vmem:[%s3014_s2] sm:$0x3]  ;;  %v521_v32 = vadd.f32 %v520_v30, %v2533_v11  ;;  %v530_v33 = vadd.f32 %v529_v31, %v2515_v5  ;;  %v577_v30 = vlaneseq  ;;  %vm831_vm3 = vcmask 1041408   ;;  %s2258_s4 = smov 127   ;;  %s2259_s10 = smov 113  }
  0x73   : > { %1904 = vmatprep.subr.bf16.mxu0 %v2530_v10  ;;  %729 = vadd.xlane.f32.xlu1 %v728_v13  ;;  %s3030_s23 = smov 112   ;;  %s3028_s25 = smov 111   ;;  %vm1357_vm12 = vcmask 1043456   ;;  %vm1360_vm13 = vcmask 1045504   ;;  %vm1373_vm14 = vcmask 146432  }
  0x74   : > { %v522_v34 = vadd.f32 %v521_v32, %v2536_v12  ;;  %v531_v35 = vadd.f32 %v530_v33, %v2518_v6  ;;  %v2574_v31 = vshrl.u32 %v577_v30, 7  ;;  %s3052_s14 = smov 1  }
  0x75   : > { %726 = vadd.xlane.f32.xlu0 %v725_v14  ;;  %v444_v49 = vstv %s443_s26  ;;  %v542_v50 = vstv %s1817_s28  ;;  %s1869_s26 = sshll.u32 %s2346_s21, 10  ;;  %s1695_s21 = scalar_lea.sflag [#allocation4], %s2478_s29 }
  0x76   : > { %1906 = vmatpush1.bf16.msra.mxu0 %v2546_v15  ;;  %v523_v36 = vrot.slane %v522_v34, 4  ;;  %v532_v37 = vrot.slane %v531_v35, 4  ;;  %v546_v53 = vstv %s1818_s22  ;;  %v552_v60 = vstv %s1819_s13  ;;  %s2254_s22 = smov 17   ;;  %s2255_s13 = smov 15  }
  0x77   : > { %732 = vadd.xlane.f32.xlu1 %v731_v16  ;;  %1915 = vmatprep.subr.bf16.mxu0 %v2252_v18  ;;  %v558_v13 = vstv %s1820_s16  ;;  %v2577_v32 = vsub.s32 0, %v2574_v31  ;;  %s2256_s16 = smov 16  }
  0x78   : > { %v524_v38 = vadd.f32 %v523_v36, %v522_v34  ;;  %v533_v39 = vadd.f32 %v532_v37, %v531_v35 }
  0x79   : > { %1816 = vmatmul.mubr.msk.f32.vlgmr.msra.gmra.mrb[0].mxu0 %vm445_vm0, %v442_v17  ;;  %v562_v17 = vstv %s1821_s15  ;;  %s3032_s15 = smov 1  }
  0x7a   : > { %1888 = vmatprep.mubr.msk.f32.mxu0 %vm2253_vm1, %v2251_v7  ;;  %v525_v40 = vrot.slane %v524_v38, 2  ;;  %v534_v41 = vrot.slane %v533_v39, 2 }
  0x7c   : > { %v526_v42 = vadd.f32 %v525_v40, %v524_v38  ;;  %v535_v43 = vadd.f32 %v534_v41, %v533_v39 }
  0x7e   : > { %v527_v44 = vrot.slane %v526_v42, 1  ;;  %v536_v45 = vrot.slane %v535_v43, 1 }
  0x80   : > { %v528_v46 = vadd.f32 %v527_v44, %v526_v42  ;;  %v537_v47 = vadd.f32 %v536_v45, %v535_v43 }
  0x82   : > { %v539_v48 = vmul.f32 0.03125, %v528_v46  ;;  %v540_v51 = vmul.f32 0.03125, %v537_v47 }
  0x84   : > { %v543_v55 = vmul.f32 %v542_v50, %v539_v48  ;;  %v544_v58 = vmul.f32 %v542_v50, %v540_v51  ;;  %v816_v48 = vld [vmem:[%s3015_s3 + $0x10] sm:$0xff] }
  0xfe   : > { %v724_v19 = vpop.xlane.xlu0 %723 }
  0xff   : > { %v735_v21 = vmul.f32 0.00390625, %v724_v19 }
 0x100   : > { %v730_v20 = vpop.xlane.xlu1 %729 }
 0x101   : > { %v737_v23 = vmul.f32 0.00390625, %v730_v20 }
 0x102   : > { %v727_v22 = vpop.xlane.xlu0 %726 }
 0x103   : > { %v736_v24 = vmul.f32 0.00390625, %v727_v22 }
 0x104   : > { %v733_v25 = vpop.xlane.xlu1 %732 }
 0x105   : > { %v1916_v26 = vpack.c.bf16 %v736_v24, %v735_v21  ;;  %v738_v27 = vmul.f32 0.00390625, %v733_v25  ;;  %v814_v25 = vld [vmem:[%s3015_s3] sm:$0xff] }
 0x107   : > { %v1919_v28 = vpack.c.bf16 %v738_v27, %v737_v23  ;;  %1917 = vmatpush3.bf16.msra.mxu0 %v1916_v26 }
 0x108   : > { %1918 = vmatprep.subr.bf16.mxu0 %v2252_v18 }
 0x10b   : > { %1920 = vmatpush3.bf16.msra.mxu0 %v1919_v28 }
 0x10e   : > { %1889 = vmatmul.mubr.msk.f32.vlgmr.msra.gmra.mrb[2].mxu0 %vm445_vm0, %v739_v29 }
 0x10f   : > { %1893 = vmatprep.mubr.msk.f32.mxu0 %vm818_vm2, %v814_v25 }
 0x14c   : > { %v515_v52 = vpop.f32.mrb[0].mxu0 }
 0x14d   : > { %v516_v54 = vadd.f32 %v515_v52, %v444_v49  ;;  %v517_v56 = vpop.f32.mrb[1].mxu0 }
 0x14e   : > { %v518_v57 = vadd.f32 %v517_v56, %v444_v49  ;;  %v817_v49 = vld [vmem:[%s3015_s3 + $0x18] sm:$0xff] }
 0x14f   : > { %v547_v59 = vmul.f32 %v546_v53, %v516_v54 }
 0x150   : > { %v548_v61 = vmul.f32 %v546_v53, %v518_v57 }
 0x151   : > { %v549_v62 = vadd.f32 %v547_v59, %v543_v55 }
 0x152   : > { %v550_v63 = vadd.f32 %v548_v61, %v544_v58 }
 0x153   : > { %v553_v8 = vadd.f32 %v552_v60, %v549_v62 }
 0x154   : > { %v554_v14 = vadd.f32 %v552_v60, %v550_v63 }
 0x155   : > { %v555_v16 = vmax.f32 %v553_v8, 0.0 }
 0x156   : > { %v556_v18 = vmax.f32 %v554_v14, 0.0 }
 0x157   : > { %v559_v19 = vmul.f32 %v558_v13, %v555_v16 }
 0x158   : > { %v560_v20 = vmul.f32 %v558_v13, %v556_v18 }
 0x159   : > { %v563_v21 = vadd.f32 %v562_v17, %v559_v19  ;;  %v2262_v19 = vmov 0  }
 0x15a   : > { %v564_v22 = vadd.f32 %v562_v17, %v560_v20  ;;  %2046 = vset.pattern.permute.xlu1 %v2262_v19  ;;  %2045 = vset.pattern.permute.xlu0 %v2262_v19 }
 0x15b   : > { %v1822_v23 = vmul.f32 -1.442695, %v563_v21 }
 0x15c   : > { %v1823_v24 = vmul.f32 -1.442695, %v564_v22 }
 0x15d   : > { %2047 = vpow2.f32 %v1822_v23 }
 0x15e   : > { %2049 = vpow2.f32 %v1823_v24 }
 0x167   : > { %v2048_v26 = vpop.eup %2047 }
 0x168   : > { %v2050_v27 = vpop.eup %2049  ;;  %v571_v28 = vadd.f32 1.0, %v2048_v26 }
 0x169   : > { %v572_v29 = vadd.f32 1.0, %v2050_v27 }
 0x16a   : > { %2051 = vrcp.f32 %v571_v28  ;;  %v2673_v28 = vand.u32 127, %v577_v30  ;;  %v1838_v30 = vld [vmem:[%s3013_s1 + $0x2] ss:$8 sm:$0x3] }
 0x16b   : > { %2053 = vrcp.f32 %v572_v29  ;;  %v1837_v29 = vld [vmem:[%s3013_s1 + $0x1] ss:$8 sm:$0x3] }
 0x16c   : > { %vm1048_vm4 = vcmp.lt.s32.totalorder %v2673_v28, 16  ;;  %vm1021_vm5 = vcmp.lt.s32.totalorder %v2673_v28, 17  ;;  %vm1076_vm6 = vcmp.lt.s32.totalorder %v2673_v28, 15  ;;  %vm1104_vm7 = vcmp.lt.s32.totalorder %v2673_v28, 1 }
 0x16d   : > { %vm1151_vm8 = vcmp.lt.s32.totalorder %v2673_v28, 127  ;;  %vm1179_vm9 = vcmp.lt.s32.totalorder %v2673_v28, 113  ;;  %vm1207_vm10 = vcmp.lt.s32.totalorder %v2673_v28, 112  ;;  %vm1231_vm11 = vcmp.lt.s32.totalorder %v2673_v28, 111  ;;  %v1370_v28 = vld [vmem:[%s3017_s5 + $0x8] sm:$0xff] }
 0x174   : > { %v2052_v33 = vpop.eup %2051 }
 0x175   : > { %v2054_v34 = vpop.eup %2053  ;;  %v580_v35 = vrot.slane %v2052_v33, %v2577_v32  ;;  %v2679_v33 = vsub.s32 1, %v2574_v31 }
 0x176   : > { %v584_v36 = vrot.slane %v2054_v34, %v2577_v32  ;;  %v1024_v34 = vld [vmem:[%s3013_s1] ss:$8 sm:$0x3] }
 0x177   : > { %v585_v37 = vmul.f32 %v580_v35, %v2505_v2  ;;  %v587_v38 = vmul.f32 %v580_v35, %v2512_v4  ;;  %v589_v45 = vmul.f32 %v580_v35, %v2533_v11  ;;  %v591_v46 = vmul.f32 %v580_v35, %v2536_v12  ;;  %v596_v4 = vld [vmem:[%s3020_s8 + $0x18] sm:$0xff] }
 0x178   : > { %v586_v39 = vmul.f32 %v584_v36, %v2499_v0  ;;  %v588_v40 = vmul.f32 %v584_v36, %v2502_v1  ;;  %v590_v41 = vmul.f32 %v584_v36, %v2515_v5  ;;  %v592_v42 = vmul.f32 %v584_v36, %v2518_v6  ;;  %v593_v0 = vld [vmem:[%s3020_s8] sm:$0xff]  ;;  %v594_v1 = vld [vmem:[%s3020_s8 + $0x8] sm:$0xff] }
 0x179   : > { %v1909_v44 = vpack.c.bf16 %v587_v38, %v585_v37  ;;  %v1913_v2 = vpack.c.bf16 %v591_v46, %v589_v45  ;;  %v920_v5 = vld [vmem:[#allocation6] sm:$0xff]  ;;  %v921_v6 = vld [vmem:[#allocation6 + $0x8] sm:$0xff]  ;;  %v2690_v37 = vrot.slane %v1837_v29, %v2577_v32  ;;  %v2693_v31 = vrot.slane %v1837_v29, %v2679_v33 }
 0x17a   : > { %v1907_v43 = vpack.c.bf16 %v588_v40, %v586_v39  ;;  %v1911_v47 = vpack.c.bf16 %v592_v42, %v590_v41  ;;  %v2697_v38 = vrot.slane %v1024_v34, %v2577_v32  ;;  %v1839_v41 = vld [vmem:[%s3013_s1 + $0x3] ss:$8 sm:$0x3]  ;;  %v2707_v42 = vrot.slane %v1024_v34, %v2679_v33 }
 0x17c   : > { %1908 = vmatprep.subr.bf16.mxu1 %v1907_v43  ;;  %v2710_v43 = vrot.slane %v1838_v30, %v2577_v32 }
 0x17d   : > { %1910 = vmatpush1.bf16.msra.mxu1 %v1909_v44  ;;  %v2713_v44 = vrot.slane %v1838_v30, %v2679_v33 }
 0x17e   : > { %1912 = vmatprep.subr.bf16.mxu1 %v1911_v47 }
 0x181   : > { %1914 = vmatpush1.bf16.msra.mxu1 %v1913_v2 }
 0x182   : > { %1922 = vmatprep.subr.bf16.mxu1 %v2509_v3  ;;  %v595_v3 = vld [vmem:[%s3020_s8 + $0x10] sm:$0xff] }
 0x184   : > { %1824 = vmatmul.mubr.msk.f32.vlgmr.msra.gmra.mrb[0].mxu1 %vm445_vm0, %v593_v0 }
 0x185   : > { %703 = vmatprep.mubr.f32.mxu1 %v2251_v7  ;;  %1924 = vmatpush1.bf16.msra.mxu1 %v2526_v9  ;;  %v922_v9 = vld [vmem:[#allocation6 + $0x10] sm:$0x3] }
 0x186   : > { %1926 = vmatprep.subr.bf16.mxu1 %v2530_v10 }
 0x188   : > { %1825 = vmatmul.mubr.msk.f32.gmra.mrb[2].mxu1 %vm445_vm0, %v594_v1 }
 0x189   : > { %709 = vmatprep.mubr.f32.mxu1 %v2251_v7  ;;  %1928 = vmatpush1.bf16.msra.mxu1 %v2546_v15  ;;  %v815_v15 = vld [vmem:[%s3015_s3 + $0x8] sm:$0xff] }
 0x18c   : > { %1826 = vmatmul.mubr.msk.f32.gmra.mrb[4].mxu1 %vm445_vm0, %v595_v3 }
 0x18d   : > { %715 = vmatprep.mubr.f32.mxu1 %v2251_v7 }
 0x190   : > { %1827 = vmatmul.mubr.msk.f32.gmra.mrb[6].mxu1 %vm445_vm0, %v596_v4 }
 0x191   : > { %996 = vmatprep.mubr.f32.mxu1 %v2251_v7 }
 0x194   : > { %1834 = vmatmul.mubr.msk.f32.vlgmr.msra.gmra.mrb[8].mxu1 %vm445_vm0, %v920_v5  ;;  %v2727_v5 = vrot.slane %v1839_v41, %v2577_v32 }
 0x195   : > { %1002 = vmatprep.mubr.f32.mxu1 %v2251_v7 }
 0x198   : > { %1835 = vmatmul.mubr.msk.f32.gmra.mrb[10].mxu1 %vm445_vm0, %v921_v6  ;;  %v2730_v6 = vrot.slane %v1839_v41, %v2679_v33 }
 0x199   : > { %1008 = vmatprep.mubr.f32.mxu1 %v2251_v7 }
 0x19c   : > { %1836 = vmatmul.mubr.msk.f32.gmra.mrb[12].mxu1 %vm445_vm0, %v922_v9  ;;  %v1840_v9 = vld [vmem:[%s3013_s1 + $0x4] ss:$8 sm:$0x3] }
 0x19d   : > { %1651 = vmatprep.mubr.f32.mxu1 %v2251_v7 }
 0x1e1   : > { %v809_v10 = vpop.f32.mrb[2].mxu0 }
 0x1e2   : > { %v813_v11 = vmax.f32 %v809_v10, 0.0  ;;  %v1890_v12 = vpop.f32.mrb[3].mxu0 }
 0x1e4   : > { %1891 = vmatprep.subr.msk.mxu0 %vm831_vm3, %v813_v11 }
 0x1e5   : > { %1892 = vmatpush3.msk.msra.mxu0 %vm831_vm3, %v813_v11 }
 0x1e6   : > { %1894 = vmatmul.mubr.msk.f32.vlgmr.msra.gmra.mrb[4].mxu0 %vm818_vm2, %v815_v15 }
 0x1e7   : > { %1896 = vmatprep.mubr.msk.f32.mxu0 %vm818_vm2, %v816_v48 }
 0x1ea   : > { %1897 = vmatmul.mubr.msk.f32.gmra.mrb[6].mxu0 %vm818_vm2, %v817_v49 }
 0x1eb   : > { %1456 = vmatprep.mubr.f32.mxu0 %v2251_v7 }
 0x257   : > { %v2634_v50 = vpop.f32.mrb[0].mxu1 }
 0x258   : > { %v2636_v51 = vpop.f32.mrb[1].mxu1 }
 0x267   : > { %v998_v52 = vpop.f32.mrb[8].mxu1 }
 0x268   : > { %1015 = vrot.lane.b32.xlu0 %v998_v52, %s2254_s22  ;;  %v1000_v53 = vpop.f32.mrb[9].mxu1  ;;  %v1068_v54 = vrot.slane %v998_v52, 4  ;;  %v1040_v55 = vrot.slane %v998_v52, 2  ;;  %v1096_v58 = vrot.slane %v998_v52, 6 }
 0x269   : > { %1017 = vrot.lane.b32.xlu1 %v1000_v53, %s2254_s22  ;;  %v1041_v59 = vrot.slane %v1000_v53, 2  ;;  %v1069_v63 = vrot.slane %v1000_v53, 4  ;;  %v1097_v13 = vrot.slane %v1000_v53, 6 }
 0x26b   : > { %v2640_v56 = vpop.f32.mrb[10].mxu1 }
 0x26c   : > { %1072 = vrot.lane.b32.xlu0 %v1068_v54, %s2255_s13  ;;  %v2643_v57 = vpop.f32.mrb[11].mxu1  ;;  %v1143_v61 = vrot.slane %v2640_v56, 2  ;;  %v1171_v8 = vrot.slane %v2640_v56, 4  ;;  %v1199_v14 = vrot.slane %v2640_v56, 6 }
 0x26d   : > { %1044 = vrot.lane.b32.xlu1 %v1040_v55, %s2256_s16  ;;  %v1144_v16 = vrot.slane %v2643_v57, 2  ;;  %v1172_v17 = vrot.slane %v2643_v57, 4  ;;  %v1200_v18 = vrot.slane %v2643_v57, 6 }
 0x26f   : > { %v1010_v60 = vpop.f32.mrb[12].mxu1 }
 0x270   : > { %1100 = vrot.lane.b32.xlu0 %v1096_v58, %s3032_s15  ;;  %v1012_v62 = vpop.f32.mrb[13].mxu1 }
 0x271   : > { %1046 = vrot.lane.b32.xlu1 %v1041_v59, %s2256_s16  ;;  %v1841_v59 = vld [vmem:[%s3013_s1 + $0x5] ss:$8 sm:$0x3] }
 0x272   : > { %v2762_v19 = vrot.slane %v1841_v59, %v2679_v33 }
 0x274   : > { %1147 = vrot.lane.b32.xlu0 %v1143_v61, %s2258_s4  ;;  %v2752_v61 = vrot.slane %v1840_v9, %v2679_v33 }
 0x275   : > { %1074 = vrot.lane.b32.xlu1 %v1069_v63, %s2255_s13 }
 0x276   : > { %v1138_v29 = vmul.f32 %v2752_v61, %v2643_v57 }
 0x278   : > { %1175 = vrot.lane.b32.xlu0 %v1171_v8, %s2259_s10 }
 0x279   : > { %1102 = vrot.lane.b32.xlu1 %v1097_v13, %s3032_s15  ;;  %s3053_s15 = smov 112  }
 0x27c   : > { %1203 = vrot.lane.b32.xlu0 %v1199_v14, %s3030_s23  ;;  %v2756_v14 = vrot.slane %v1841_v59, %v2577_v32 }
 0x27d   : > { %1149 = vrot.lane.b32.xlu1 %v1144_v16, %s2258_s4  ;;  %v1842_v16 = vld [vmem:[%s3013_s1 + $0x6] ss:$8 sm:$0x3] }
 0x27e   : > { %v2777_v34 = vrot.slane %v1842_v16, %v2577_v32 }
 0x280   : > { %1227 = vrot.lane.b32.xlu0 %v1010_v60, %s3028_s25  ;;  %v2749_v60 = vrot.slane %v1840_v9, %v2577_v32 }
 0x281   : > { %1177 = vrot.lane.b32.xlu1 %v1172_v17, %s2259_s10 }
 0x285   : > { %1205 = vrot.lane.b32.xlu1 %v1200_v18, %s3030_s23  ;;  %s3055_s23 = sshll.u32 %s2478_s29, 6 }
 0x289   : > { %1229 = vrot.lane.b32.xlu1 %v1012_v62, %s3028_s25  ;;  %s433_s25 = scalar_lea.vmem [#allocation9], %s3055_s23 }
 0x28a   : > { %s1708_s28 = sshll.u32 %s433_s25, 4  ;;  %s2967_s28 = int_to_ptr.vmem [resolvable:$true] %s1708_s28 }
 0x2b9   : > { %v2664_v20 = vpop.f32.mrb[4].mxu0 }
 0x2ba   : > { %v2666_v21 = vpop.f32.mrb[5].mxu0 }
 0x2bd   : > { %v2668_v22 = vpop.f32.mrb[6].mxu0 }
 0x2be   : > { %v2670_v23 = vpop.f32.mrb[7].mxu0 }
 0x2da   : > { %v1016_v24 = vpop.permute.xlu0 %1015 }
 0x2db   : > { %v1018_v25 = vpop.permute.xlu1 %1017 }
 0x2dc   : > { %v1022_v46 = vsel %vm1021_vm5, %v1016_v24, %v1018_v25  ;;  %v1023_v47 = vsel %vm1021_vm5, %v1018_v25, %v1016_v24  ;;  %v1843_v24 = vld [vmem:[%s3013_s1 + $0x7] ss:$8 sm:$0x3]  ;;  %v1137_v25 = vmul.f32 %v2749_v60, %v2640_v56 }
 0x2dd   : > { %v1036_v10 = vmul.f32 %v2697_v38, %v1023_v47  ;;  %v1037_v11 = vmul.f32 %v2707_v42, %v1022_v46  ;;  %v2791_v57 = vrot.slane %v1843_v24, %v2679_v33 }
 0x2de   : > { %v1073_v26 = vpop.permute.xlu0 %1072 }
 0x2df   : > { %v1045_v27 = vpop.permute.xlu1 %1044 }
 0x2e2   : > { %v1101_v35 = vpop.permute.xlu0 %1100 }
 0x2e3   : > { %v1047_v36 = vpop.permute.xlu1 %1046 }
 0x2e4   : > { %v1049_v39 = vsel %vm1048_vm4, %v1045_v27, %v1047_v36  ;;  %v1050_v40 = vsel %vm1048_vm4, %v1047_v36, %v1045_v27 }
 0x2e5   : > { %v1064_v1 = vmul.f32 %v2690_v37, %v1050_v40  ;;  %v1065_v3 = vmul.f32 %v2693_v31, %v1049_v39  ;;  %v2788_v39 = vrot.slane %v1843_v24, %v2577_v32  ;;  %v598_v24 = vld [vmem:[%s3021_s9 + $0x8] sm:$0xff] }
 0x2e6   : > { %v1148_v4 = vpop.permute.xlu0 %1147 }
 0x2e7   : > { %v1075_v45 = vpop.permute.xlu1 %1074  ;;  %v1066_v53 = vadd.f32 %v1064_v1, %v1036_v10  ;;  %v1067_v54 = vadd.f32 %v1065_v3, %v1037_v11 }
 0x2e8   : > { %v1077_v2 = vsel %vm1076_vm6, %v1073_v26, %v1075_v45  ;;  %v1078_v0 = vsel %vm1076_vm6, %v1075_v45, %v1073_v26 }
 0x2e9   : > { %v1092_v12 = vmul.f32 %v2710_v43, %v1078_v0  ;;  %v1093_v15 = vmul.f32 %v2713_v44, %v1077_v2  ;;  %v1844_v2 = vld [vmem:[%s3013_s1 + $0x10] ss:$8 sm:$0x3] }
 0x2ea   : > { %v1176_v8 = vpop.permute.xlu0 %1175  ;;  %v2806_v10 = vrot.slane %v1844_v2, %v2577_v32  ;;  %v2809_v11 = vrot.slane %v1844_v2, %v2679_v33 }
 0x2eb   : > { %v1103_v48 = vpop.permute.xlu1 %1102  ;;  %v1094_v62 = vadd.f32 %v1092_v12, %v1066_v53  ;;  %v1095_v63 = vadd.f32 %v1093_v15, %v1067_v54 }
 0x2ec   : > { %v1105_v49 = vsel %vm1104_vm7, %v1101_v35, %v1103_v48  ;;  %v1106_v52 = vsel %vm1104_vm7, %v1103_v48, %v1101_v35  ;;  %v2780_v35 = vrot.slane %v1842_v16, %v2679_v33 }
 0x2ed   : > { %v1120_v55 = vmul.f32 %v2727_v5, %v1106_v52  ;;  %v1121_v58 = vmul.f32 %v2730_v6, %v1105_v49 }
 0x2ee   : > { %v1204_v40 = vpop.permute.xlu0 %1203 }
 0x2ef   : > { %v1150_v13 = vpop.permute.xlu1 %1149  ;;  %v1122_v17 = vadd.f32 %v1120_v55, %v1094_v62  ;;  %v1123_v18 = vadd.f32 %v1121_v58, %v1095_v63 }
 0x2f0   : > { %v1152_v26 = vsel %vm1151_vm8, %v1148_v4, %v1150_v13  ;;  %v1153_v27 = vsel %vm1151_vm8, %v1150_v13, %v1148_v4 }
 0x2f1   : > { %v1139_v41 = vadd.f32 %v1137_v25, %v1122_v17  ;;  %v1140_v45 = vadd.f32 %v1138_v29, %v1123_v18  ;;  %v1167_v46 = vmul.f32 %v2756_v14, %v1152_v26  ;;  %v1168_v47 = vmul.f32 %v2762_v19, %v1153_v27  ;;  %v597_v18 = vld [vmem:[%s3021_s9] sm:$0xff] }
 0x2f2   : > { %v1228_v52 = vpop.permute.xlu0 %1227 }
 0x2f3   : > { %v1178_v36 = vpop.permute.xlu1 %1177  ;;  %v1169_v12 = vadd.f32 %v1167_v46, %v1139_v41  ;;  %v1170_v15 = vadd.f32 %v1168_v47, %v1140_v45 }
 0x2f4   : > { %v1180_v56 = vsel %vm1179_vm9, %v1176_v8, %v1178_v36  ;;  %v1181_v30 = vsel %vm1179_vm9, %v1178_v36, %v1176_v8 }
 0x2f5   : > { %v1195_v0 = vmul.f32 %v2777_v34, %v1180_v56  ;;  %v1196_v1 = vmul.f32 %v2780_v35, %v1181_v30 }
 0x2f7   : > { %v1206_v3 = vpop.permute.xlu1 %1205  ;;  %v1197_v53 = vadd.f32 %v1195_v0, %v1169_v12  ;;  %v1198_v54 = vadd.f32 %v1196_v1, %v1170_v15 }
 0x2f8   : > { %v1208_v4 = vsel %vm1207_vm10, %v1204_v40, %v1206_v3  ;;  %v1209_v9 = vsel %vm1207_vm10, %v1206_v3, %v1204_v40 }
 0x2f9   : > { %v1223_v48 = vmul.f32 %v2788_v39, %v1208_v4  ;;  %v1224_v49 = vmul.f32 %v2791_v57, %v1209_v9 }
 0x2fb   : > { %v1230_v55 = vpop.permute.xlu1 %1229  ;;  %v1225_v59 = vadd.f32 %v1223_v48, %v1197_v53  ;;  %v1226_v62 = vadd.f32 %v1224_v49, %v1198_v54 }
 0x2fc   : > { %v1232_v58 = vsel %vm1231_vm11, %v1228_v52, %v1230_v55  ;;  %v1233_v32 = vsel %vm1231_vm11, %v1230_v55, %v1228_v52 }
 0x2fd   : > { %v1247_v33 = vmul.f32 %v2806_v10, %v1232_v58  ;;  %v1248_v63 = vmul.f32 %v2809_v11, %v1233_v32 }
 0x2ff   : > { %v1249_v8 = vadd.f32 %v1247_v33, %v1225_v59  ;;  %v1250_v13 = vadd.f32 %v1248_v63, %v1226_v62 }
 0x301   : > { %v1251_v16 = vmax.f32 %v1249_v8, 0.0  ;;  %v1252_v17 = vmax.f32 %v1250_v13, 0.0 }
 0x303   : > { %1263 = vrot.lane.b32.xlu1 %v1252_v17, %s2256_s16  ;;  %1261 = vrot.lane.b32.xlu0 %v1251_v16, %s2256_s16  ;;  %v1286_v4 = vmul.f32 %v1252_v17, %v2752_v61 }
 0x307   : > { %1289 = vrot.lane.b32.xlu1 %v1252_v17, %s2258_s4  ;;  %1287 = vrot.lane.b32.xlu0 %v1251_v16, %s2258_s4  ;;  %s3054_s4 = smov 111  }
 0x30b   : > { %1271 = vrot.lane.b32.xlu1 %v1252_v17, %s2255_s13  ;;  %1269 = vrot.lane.b32.xlu0 %v1251_v16, %s2255_s13 }
 0x30f   : > { %1297 = vrot.lane.b32.xlu1 %v1252_v17, %s2259_s10  ;;  %1295 = vrot.lane.b32.xlu0 %v1251_v16, %s2259_s10 }
 0x313   : > { %1255 = vrot.lane.b32.xlu1 %v1252_v17, %s2254_s22  ;;  %1253 = vrot.lane.b32.xlu0 %v1251_v16, %s2254_s22  ;;  %s2263_s22 = smov [#allocation9]  }
 0x314   : > { %s2172_s13 = sshll.u32 %s2263_s22, 4  ;;  %s2173_s13 = int_to_ptr.vmem [resolvable:$false] %s2172_s13 }
 0x315   : > { %s2174_s10 = scalar_lea.vmem %s2173_s13, 2048  ;;  %p2175_p1 = scmp.lt.s32.totalorder %s2967_s28, %s2173_s13 }
 0x317   : > { %1279 = vrot.lane.b32.xlu1 %v1252_v17, %s3052_s14  ;;  %1277 = vrot.lane.b32.xlu0 %v1251_v16, %s3052_s14 }
 0x31b   : > { %1305 = vrot.lane.b32.xlu1 %v1252_v17, %s3053_s15  ;;  %1303 = vrot.lane.b32.xlu0 %v1251_v16, %s3053_s15 }
 0x31f   : > { %1313 = vrot.lane.b32.xlu1 %v1252_v17, %s3054_s4  ;;  %1311 = vrot.lane.b32.xlu0 %v1251_v16, %s3054_s4  ;;  %s2965_s4 = scalar_lea.hbm %s3023_s11, %s1869_s26 }
 0x323   : > { %1488 = vperm.xlu1 %2046, %v2664_v20   ;;  %1483 = vperm.xlu0 %2045, %v2666_v21   ;;  %v599_v20 = vld [vmem:[%s3021_s9 + $0x10] sm:$0xff]  ;;  %v600_v21 = vld [vmem:[%s3021_s9 + $0x18] sm:$0xff] }
 0x327   : > { %1493 = vperm.xlu1 %2046, %v2670_v23   ;;  %1498 = vperm.xlu0 %2045, %v2668_v22  }
 0x32b   : > { %603 = vperm.xlu1 %2046, %v597_v18   ;;  %608 = vperm.xlu0 %2045, %v598_v24  }
 0x32f   : > { %613 = vperm.xlu1 %2046, %v599_v20   ;;  %618 = vperm.xlu0 %2045, %v600_v21  }
 0x375   : > { %v1264_v22 = vpop.permute.xlu1 %1263  ;;  %v1262_v23 = vpop.permute.xlu0 %1261 }
 0x376   : > { %v1266_v30 = vsel %vm1048_vm4, %v1264_v22, %v1262_v23  ;;  %v1265_v40 = vsel %vm1048_vm4, %v1262_v23, %v1264_v22 }
 0x377   : > { %v1267_v3 = vmul.f32 %v1266_v30, %v2690_v37  ;;  %v1268_v12 = vmul.f32 %v1265_v40, %v2693_v31  ;;  %v1285_v31 = vmul.f32 %v1251_v16, %v2749_v60 }
 0x379   : > { %v1290_v25 = vpop.permute.xlu1 %1289  ;;  %v1288_v26 = vpop.permute.xlu0 %1287  ;;  %v1322_v59 = vrot.slane %v1268_v12, 6 }
 0x37a   : > { %v1291_v41 = vsel %vm1151_vm8, %v1288_v26, %v1290_v25  ;;  %v1292_v45 = vsel %vm1151_vm8, %v1290_v25, %v1288_v26 }
 0x37b   : > { %v1293_v15 = vmul.f32 %v1291_v41, %v2756_v14  ;;  %v1294_v48 = vmul.f32 %v1292_v45, %v2762_v19 }
 0x37d   : > { %v1272_v27 = vpop.permute.xlu1 %1271  ;;  %v1270_v29 = vpop.permute.xlu0 %1269  ;;  %v1339_v62 = vrot.slane %v1293_v15, 6  ;;  %v1340_v33 = vrot.slane %v1294_v48, 6 }
 0x37e   : > { %v1274_v2 = vsel %vm1076_vm6, %v1272_v27, %v1270_v29  ;;  %v1273_v52 = vsel %vm1076_vm6, %v1270_v29, %v1272_v27 }
 0x37f   : > { %v1275_v37 = vmul.f32 %v1274_v2, %v2710_v43  ;;  %v1276_v60 = vmul.f32 %v1273_v52, %v2713_v44  ;;  %v1363_v21 = vsel %vm831_vm3, %v1285_v31, %v1339_v62  ;;  %v1364_v23 = vsel %vm831_vm3, %v1286_v4, %v1340_v33  ;;  %v1369_v4 = vld [vmem:[%s3017_s5] sm:$0xff] }
 0x381   : > { %v1298_v36 = vpop.permute.xlu1 %1297  ;;  %v1296_v56 = vpop.permute.xlu0 %1295  ;;  %v1328_v22 = vrot.slane %v1276_v60, 4 }
 0x382   : > { %v1299_v0 = vsel %vm1179_vm9, %v1296_v56, %v1298_v36  ;;  %v1300_v1 = vsel %vm1179_vm9, %v1298_v36, %v1296_v56 }
 0x383   : > { %v1301_v61 = vmul.f32 %v1299_v0, %v2777_v34  ;;  %v1302_v53 = vmul.f32 %v1300_v1, %v2780_v35  ;;  %v1321_v35 = vrot.slane %v1267_v3, 6 }
 0x385   : > { %v1256_v46 = vpop.permute.xlu1 %1255  ;;  %v1254_v47 = vpop.permute.xlu0 %1253  ;;  %v1345_v63 = vrot.slane %v1301_v61, 4  ;;  %v1346_v8 = vrot.slane %v1302_v53, 4 }
 0x386   : > { %v1258_v9 = vsel %vm1021_vm5, %v1256_v46, %v1254_v47  ;;  %v1257_v49 = vsel %vm1021_vm5, %v1254_v47, %v1256_v46 }
 0x387   : > { %v1259_v14 = vmul.f32 %v1258_v9, %v2697_v38  ;;  %v1260_v32 = vmul.f32 %v1257_v49, %v2707_v42  ;;  %v1327_v38 = vrot.slane %v1275_v37, 4  ;;  %v1365_v56 = vsel %vm1357_vm12, %v1363_v21, %v1345_v63 }
 0x389   : > { %v1280_v54 = vpop.permute.xlu1 %1279  ;;  %v1278_v55 = vpop.permute.xlu0 %1277  ;;  %v1355_v17 = vsel %vm831_vm3, %v1259_v14, %v1321_v35 }
 0x38a   : > { %v1281_v19 = vsel %vm1104_vm7, %v1278_v55, %v1280_v54  ;;  %v1282_v58 = vsel %vm1104_vm7, %v1280_v54, %v1278_v55  ;;  %v1358_v25 = vsel %vm1357_vm12, %v1355_v17, %v1327_v38 }
 0x38b   : > { %v1283_v43 = vmul.f32 %v1282_v58, %v2727_v5  ;;  %v1284_v34 = vmul.f32 %v1281_v19, %v2730_v6  ;;  %v1356_v6 = vsel %vm831_vm3, %v1260_v32, %v1322_v59 }
 0x38c   : > { %v1359_v40 = vsel %vm1357_vm12, %v1356_v6, %v1328_v22 }
 0x38d   : > { %v1306_v13 = vpop.permute.xlu1 %1305  ;;  %v1304_v16 = vpop.permute.xlu0 %1303  ;;  %v1333_v18 = vrot.slane %v1283_v43, 2  ;;  %v1334_v24 = vrot.slane %v1284_v34, 2 }
 0x38e   : > { %v1307_v42 = vsel %vm1207_vm10, %v1304_v16, %v1306_v13  ;;  %v1308_v5 = vsel %vm1207_vm10, %v1306_v13, %v1304_v16 }
 0x38f   : > { %v1309_v44 = vmul.f32 %v1307_v42, %v2788_v39  ;;  %v1310_v20 = vmul.f32 %v1308_v5, %v2791_v57  ;;  %v1361_v30 = vsel %vm1360_vm13, %v1358_v25, %v1333_v18  ;;  %v1366_v39 = vsel %vm1357_vm12, %v1364_v23, %v1346_v8 }
 0x390   : > { %v1362_v45 = vsel %vm1360_vm13, %v1359_v40, %v1334_v24 }
 0x391   : > { %v1351_v26 = vrot.slane %v1309_v44, 2  ;;  %v1352_v27 = vrot.slane %v1310_v20, 2  ;;  %v1314_v29 = vpop.permute.xlu1 %1313  ;;  %v1312_v36 = vpop.permute.xlu0 %1311 }
 0x392   : > { %v1316_v41 = vsel %vm1231_vm11, %v1314_v29, %v1312_v36  ;;  %v1315_v0 = vsel %vm1231_vm11, %v1312_v36, %v1314_v29 }
 0x393   : > { %v1367_v57 = vsel %vm1360_vm13, %v1365_v56, %v1351_v26  ;;  %v1368_v46 = vsel %vm1360_vm13, %v1366_v39, %v1352_v27  ;;  %v1318_v1 = vmul.f32 %v1316_v41, %v2809_v11  ;;  %v1317_v3 = vmul.f32 %v1315_v0, %v2806_v10  ;;  %v1371_v10 = vld [vmem:[%s3017_s5 + $0x10] sm:$0xff]  ;;  %v1372_v11 = vld [vmem:[%s3017_s5 + $0x18] sm:$0xff] }
 0x394   : > { %v1929_v47 = vpack.c.bf16 %v1368_v46, %v1362_v45  ;;  %v1931_v2 = vpack.c.bf16 %v1367_v57, %v1361_v30  ;;  %v2087_v57 = vld [vmem:[%s2484_s30] sm:$0xff]  ;;  %v2088_v45 = vld [vmem:[%s2484_s30 + $0x10] sm:$0xff]  ;;  %v2090_v0 = vld [vmem:[%s2484_s30 + $0x18] sm:$0xff] }
 0x396   : > { %1930 = vmatprep.subr.bf16.mxu0 %v1929_v47  ;;  %v2089_v47 = vld [vmem:[%s2484_s30 + $0x8] sm:$0xff] }
 0x397   : > { %1932 = vmatpush1.bf16.msra.mxu0 %v1931_v2 }
 0x398   : > { %1845 = vmatprep.subr.msk.mxu0 %vm831_vm3, %v1318_v1 }
 0x39b   : > { %1846 = vmatpush1.msk.msra.mxu0 %vm831_vm3, %v1317_v3 }
 0x39c   : > { %1847 = vmatmul.mubr.msk.f32.vlgmr.msra.gmra.mrb[8].mxu0 %vm1373_vm14, %v1369_v4 }
 0x39d   : > { %1462 = vmatprep.mubr.f32.mxu0 %v2251_v7 }
 0x3a0   : > { %1848 = vmatmul.mubr.msk.f32.gmra.mrb[10].mxu0 %vm1373_vm14, %v1370_v28 }
 0x3a1   : > { %1468 = vmatprep.mubr.f32.mxu0 %v2251_v7 }
 0x3a2   : > { %v1484_v9 = vpop.permute.xlu0 %1483  ;;  %v1489_v49 = vpop.permute.xlu1 %1488 }
 0x3a4   : > { %1849 = vmatmul.mubr.msk.f32.gmra.mrb[12].mxu0 %vm1373_vm14, %v1371_v10 }
 0x3a5   : > { %1474 = vmatprep.mubr.f32.mxu0 %v2251_v7 }
 0x3a6   : > { %v1494_v19 = vpop.permute.xlu1 %1493  ;;  %v1499_v62 = vpop.permute.xlu0 %1498 }
 0x3a8   : > { %1850 = vmatmul.mubr.msk.f32.gmra.mrb[14].mxu0 %vm1373_vm14, %v1372_v11 }
 0x3a9   : > { %1645 = vmatprep.mubr.f32.mxu0 %v2251_v7 }
 0x46f   : > { %v1458_v12 = vpop.f32.mrb[8].mxu0 }
 0x470   : > { %v1501_v15 = vmul.f32 %v1484_v9, %v1458_v12  ;;  %v1460_v48 = vpop.f32.mrb[9].mxu0 }
 0x471   : > { %v1502_v52 = vmul.f32 %v1484_v9, %v1460_v48  ;;  %v2091_v9 = vld [vmem:[%s2484_s30 + $0x20] sm:$0xff] }
 0x472   : > { %v1851_v37 = vmul.f32 -1.442695, %v1501_v15  ;;  %v2092_v15 = vld [vmem:[%s2484_s30 + $0x30] sm:$0xff] }
 0x473   : > { %v1852_v61 = vmul.f32 -1.442695, %v1502_v52  ;;  %v1464_v53 = vpop.f32.mrb[10].mxu0 }
 0x474   : > { %2055 = vpow2.f32 %v1851_v37  ;;  %v1503_v54 = vmul.f32 %v1489_v49, %v1464_v53  ;;  %v1466_v55 = vpop.f32.mrb[11].mxu0  ;;  %v2093_v37 = vld [vmem:[%s2484_s30 + $0x28] sm:$0xff]  ;;  %v2094_v53 = vld [vmem:[%s2484_s30 + $0x38] sm:$0xff]  ;;  %s2168_s30 = scalar_lea.vmem %s2967_s28, 1024 }
 0x475   : > { %2057 = vpow2.f32 %v1852_v61  ;;  %v1504_v31 = vmul.f32 %v1489_v49, %v1466_v55  ;;  %p2169_p9 = scmp.ne.s32.totalorder %s2967_s28, %s2168_s30  ;;  %p2176_p6 = scmp.lt.s32.totalorder %s2174_s10, %s2168_s30 }
 0x476   : > { %v1853_v14 = vmul.f32 -1.442695, %v1503_v54 }
 0x477   : > { %v1854_v58 = vmul.f32 -1.442695, %v1504_v31  ;;  %v1470_v32 = vpop.f32.mrb[12].mxu0  ;;  %v1565_v31 = vld [vmem:[%s3019_s7] sm:$0xff]  ;;  %p2170_p12 = pnand %p2169_p9, %p2426_p7  ;;  %p2177_p8 = por %p2176_p6, %p2175_p1 }
 0x478   : > { %2059 = vpow2.f32 %v1853_v14  ;;  %v1505_v43 = vmul.f32 %v1494_v19, %v1470_v32  ;;  %v1472_v34 = vpop.f32.mrb[13].mxu0  ;;  %v1566_v14 = vld [vmem:[%s3019_s7 + $0x8] sm:$0xff]  ;;  %v604_v32 = vpop.permute.xlu1 %603 }
 0x479   : > { %2061 = vpow2.f32 %v1854_v58  ;;  %v1506_v35 = vmul.f32 %v1494_v19, %v1472_v34  ;;  %v1567_v19 = vld [vmem:[%s3019_s7 + $0x10] sm:$0xff]  ;;  %v1568_v58 = vld [vmem:[%s3019_s7 + $0x18] sm:$0xff]  ;;  %v609_v34 = vpop.permute.xlu0 %608  ;;  %p2171_p10 = pneg %p2170_p12 }
 0x47a   : > { %v1855_v59 = vmul.f32 -1.442695, %v1505_v43  ;;  %v700_v43 = vadd.f32 %v2634_v50, %v604_v32 }
 0x47b   : > { %v1856_v60 = vmul.f32 -1.442695, %v1506_v35  ;;  %v1476_v33 = vpop.f32.mrb[14].mxu0  ;;  %v702_v35 = vadd.f32 %v2636_v51, %v604_v32  ;;  %p2178_p13 = pnand %p2177_p8, %p2171_p10 }
 0x47c   : > { %2063 = vpow2.f32 %v1855_v59  ;;  %v1507_v38 = vmul.f32 %v1499_v62, %v1476_v33  ;;  %v1478_v63 = vpop.f32.mrb[15].mxu0 }
 0x47d   : > { %2065 = vpow2.f32 %v1856_v60  ;;  %v1508_v8 = vmul.f32 %v1499_v62, %v1478_v63 }
 0x47e   : > { %v2056_v13 = vpop.eup %2055  ;;  %v1857_v16 = vmul.f32 -1.442695, %v1507_v38 }
 0x47f   : > { %v2058_v17 = vpop.eup %2057  ;;  %v1533_v18 = vadd.f32 1.0, %v2056_v13  ;;  %v1858_v42 = vmul.f32 -1.442695, %v1508_v8 }
 0x480   : > { %v1534_v5 = vadd.f32 1.0, %v2058_v17  ;;  %2067 = vpow2.f32 %v1857_v16  ;;  %v614_v17 = vpop.permute.xlu1 %613 }
 0x481   : > { %2069 = vrcp.f32 %v1533_v18 }
 0x482   : > { %v2060_v6 = vpop.eup %2059  ;;  %2071 = vpow2.f32 %v1858_v42 }
 0x483   : > { %v2062_v24 = vpop.eup %2061  ;;  %v1535_v44 = vadd.f32 1.0, %v2060_v6  ;;  %2073 = vrcp.f32 %v1534_v5 }
 0x484   : > { %v1536_v20 = vadd.f32 1.0, %v2062_v24 }
 0x485   : > { %2075 = vrcp.f32 %v1535_v44  ;;  %v619_v44 = vpop.permute.xlu0 %618 }
 0x486   : > { %v2064_v21 = vpop.eup %2063  ;;  %2077 = vrcp.f32 %v1536_v20 }
 0x487   : > { %v2066_v22 = vpop.eup %2065  ;;  %v1537_v23 = vadd.f32 1.0, %v2064_v21 }
 0x488   : > { %v1538_v26 = vadd.f32 1.0, %v2066_v22 }
 0x489   : > { %2079 = vrcp.f32 %v1537_v23 }
 0x48a   : > { %v2068_v25 = vpop.eup %2067 }
 0x48b   : > { %v1539_v27 = vadd.f32 1.0, %v2068_v25  ;;  %v2070_v29 = vpop.eup %2069 }
 0x48c   : > { %v2072_v36 = vpop.eup %2071  ;;  %v1557_v41 = vmul.f32 %v2087_v57, %v2070_v29 }
 0x48d   : > { %2081 = vrcp.f32 %v1539_v27  ;;  %v2074_v56 = vpop.eup %2073  ;;  %v1540_v30 = vadd.f32 1.0, %v2072_v36 }
 0x48e   : > { %2083 = vrcp.f32 %v1538_v26  ;;  %v1558_v2 = vmul.f32 %v2089_v47, %v2074_v56 }
 0x48f   : > { %v2076_v40 = vpop.eup %2075  ;;  %2085 = vrcp.f32 %v1540_v30 }
 0x490   : > { %v2078_v39 = vpop.eup %2077  ;;  %v1559_v46 = vmul.f32 %v2088_v45, %v2076_v40 }
 0x491   : > { %v1560_v1 = vmul.f32 %v2090_v0, %v2078_v39 }
 0x492   : > { %v1935_v3 = vpack.c.bf16 %v1559_v46, %v1557_v41 }
 0x493   : > { %v1933_v4 = vpack.c.bf16 %v1560_v1, %v1558_v2  ;;  %v2080_v28 = vpop.eup %2079 }
 0x494   : > { %v1561_v12 = vmul.f32 %v2091_v9, %v2080_v28 }
 0x495   : > { %1934 = vmatprep.subr.bf16.mxu0 %v1933_v4  ;;  %1941 = vmatprep.subr.bf16.mxu1 %v1933_v4 }
 0x496   : > { %1936 = vmatpush1.bf16.msra.mxu0 %v1935_v3  ;;  %1943 = vmatpush1.bf16.msra.mxu1 %v1935_v3 }
 0x497   : > { %v2082_v10 = vpop.eup %2081 }
 0x498   : > { %v2084_v11 = vpop.eup %2083  ;;  %v1563_v48 = vmul.f32 %v2092_v15, %v2082_v10 }
 0x499   : > { %v2086_v49 = vpop.eup %2085  ;;  %v1562_v61 = vmul.f32 %v2093_v37, %v2084_v11 }
 0x49a   : > { %v1939_v52 = vpack.c.bf16 %v1563_v48, %v1561_v12  ;;  %v1564_v54 = vmul.f32 %v2094_v53, %v2086_v49 }
 0x49c   : > { %v1937_v55 = vpack.c.bf16 %v1564_v54, %v1562_v61 }
 0x49e   : > { %1938 = vmatprep.subr.bf16.mxu0 %v1937_v55  ;;  %1942 = vmatprep.subr.bf16.mxu1 %v1937_v55 }
 0x49f   : > { %1940 = vmatpush1.bf16.msra.mxu0 %v1939_v52  ;;  %1944 = vmatpush1.bf16.msra.mxu1 %v1939_v52 }
 0x4a2   : > { %1859 = vmatmul.mubr.msk.f32.vlgmr.msra.gmra.mrb[16].mxu0 %vm445_vm0, %v1565_v31  ;;  %1860 = vmatmul.mubr.msk.f32.vlgmr.msra.gmra.mrb[2].mxu1 %vm445_vm0, %v1566_v14 }
 0x4a3   : > { %1657 = vmatprep.mubr.f32.mxu1 %v2251_v7 }
 0x4a6   : > { %1861 = vmatmul.mubr.msk.f32.gmra.mrb[4].mxu1 %vm445_vm0, %v1567_v19 }
 0x4a7   : > { %1663 = vmatprep.mubr.f32.mxu1 %v2251_v7 }
 0x4aa   : > { %1862 = vmatmul.mubr.msk.f32.gmra.mrb[6].mxu1 %vm445_vm0, %v1568_v58 }
 0x575   : > { %v1647_v59 = vpop.f32.mrb[16].mxu0  ;;  %v1653_v62 = vpop.f32.mrb[2].mxu1 }
 0x576   : > { %v1670_v60 = vadd.f32 %v1647_v59, %v700_v43  ;;  %v1949_v33 = vadd.f32 %v1653_v62, %v609_v34  ;;  %v1649_v38 = vpop.f32.mrb[17].mxu0  ;;  %v1655_v63 = vpop.f32.mrb[3].mxu1 }
 0x577   : > { %v1671_v7 = vadd.f32 %v1649_v38, %v702_v35  ;;  %v1950_v8 = vadd.f32 %v1655_v63, %v609_v34 }
 0x578   : > { %v1678_v13 = vmax.f32 %v1670_v60, 0.0  ;;  %v1680_v16 = vmax.f32 %v1949_v33, 0.0 }
 0x579   : > { %v1679_v18 = vmax.f32 %v1671_v7, 0.0  ;;  %v1681_v42 = vmax.f32 %v1950_v8, 0.0  ;;  %v1659_v5 = vpop.f32.mrb[4].mxu1 }
 0x57a   : > { %1686 = vst [vmem:[%s433_s25] sm:$0xff] %v1678_v13  ;;  %1688 = vst [vmem:[%s433_s25 + $0x10] sm:$0xff] %v1680_v16  ;;  %v1951_v50 = vadd.f32 %v1659_v5, %v614_v17  ;;  %v1661_v51 = vpop.f32.mrb[5].mxu1 }
 0x57b   : > { %1687 = vst [vmem:[%s433_s25 + $0x8] sm:$0xff] %v1679_v18  ;;  %1689 = vst [vmem:[%s433_s25 + $0x18] sm:$0xff] %v1681_v42  ;;  %v1952_v6 = vadd.f32 %v1661_v51, %v614_v17 }
 0x57c   : > { %v1682_v24 = vmax.f32 %v1951_v50, 0.0 }
 0x57d   : > { %v1683_v20 = vmax.f32 %v1952_v6, 0.0  ;;  %v1665_v21 = vpop.f32.mrb[6].mxu1 }
 0x57e   : > { %1690 = vst [vmem:[%s433_s25 + $0x20] sm:$0xff] %v1682_v24  ;;  %v1953_v22 = vadd.f32 %v1665_v21, %v619_v44  ;;  %v1667_v23 = vpop.f32.mrb[7].mxu1 }
 0x57f   : > { %1691 = vst [vmem:[%s433_s25 + $0x28] sm:$0xff] %v1683_v20  ;;  %v1954_v25 = vadd.f32 %v1667_v23, %v619_v44 }
 0x580   : > { %v1684_v26 = vmax.f32 %v1953_v22, 0.0 }
 0x581   : > { %v1685_v27 = vmax.f32 %v1954_v25, 0.0 }
 0x582   : > { %1692 = vst [vmem:[%s433_s25 + $0x30] sm:$0xff] %v1684_v26 }
 0x583   : > { %1693 = vst [vmem:[%s433_s25 + $0x38] sm:$0xff] %v1685_v27 }
 0x584   : > { %2181 = shalt.err (!%p2178_p13)
}
 0x585   : > { %s2182_s23 = scalar_lea.hbm %s2965_s4, 1024  ;;  %s2186_s14 = scalar_lea.hbm %s3023_s11, 2048 }
 0x586   : > { %p2183_p2 = scmp.ne.s32.totalorder %s2965_s4, %s2182_s23  ;;  %p2187_p0 = scmp.lt.u32.totalorder %s2965_s4, %s3023_s11 }
 0x587   : > { %p2188_p3 = scmp.lt.u32.totalorder %s2186_s14, %s2182_s23  ;;  %p2190_p9 = scmp.lt.u32.totalorder %s2182_s23, %s2965_s4 }
 0x588   : > { %p2184_p4 = pnand %p2183_p2, %p2426_p7 }
 0x589   : > { %p2189_p5 = por %p2188_p3, %p2187_p0 }
 0x58a   : > { %p2185_p11 = pneg %p2184_p4 }
 0x58b   : > { %p2191_p12 = por %p2190_p9, %p2189_p5 }
 0x58d   : > { %p2192_p10 = pnand %p2191_p12, %p2185_p11 }
 0x58f   : > { %2195 = shalt.err (!%p2192_p10)
}
 0x590   : > { %s2264_s30 = smov 256  }
 0x591   : > { %1971 = dma.vmem_to_hbm [thread:$0]  (%p2426_p7), %s2967_s28, 1024, %s2965_s4, %s1695_s21, %s2264_s30, %s2264_s30, %s2256_s16  }
 0x592 PF: > { %s1723_s13 = sand.u32 1, %s2230_s17   ;;  %p3056_p1 = scmp.ne.s32.totalorder %s3037_s24, 0 }
 0x593   : > { %p3057_p6 = scmp.ge.s32.totalorder %s2242_s20, 2  ;;  %s1724_s10 = scalar_lea.sflag [#allocation4], %s1723_s13 }
 0x595   : > { %p1985_p8 = pnand %p3057_p6, %p3056_p1 }
 0x597   : > { %2225 = dma.done.wait (!%p1985_p8), %s1724_s10, 1024  }
 0x598   : > { %2227 = vsyncadd (!%p1985_p8), %s1724_s10, 4294966272  ;;  %s3058_s12 = sld [smem:[#allocation14_spill]]  ;;  %p26_p13 = scmp.ge.s32.totalorder %s2416_s27, 4  }
 0x599   : > { %s3059_s17 = smov %s2234_s18  ;;  %s3060_s18 = smov %s2238_s19 }
 0x59a   : > { %s3062_s20 = smov %s2416_s27  ;;  %28 = sbr.rel (!%p26_p13) target bundleno = 10 (0xa), region = 126 }
 0x59e   : > { %s3061_s19 = smov %s3058_s12 }
 0x5a1   :  { %1729 = vsyncpa [#allocation3], 1 }
 0x5a2   :  { %1731 = vsyncpa [#allocation3 + $0x1], 1 }
 0x5a3   :  { %1732 = vsyncpa [#allocation7], 1 }
 0x5a4   :  { %1733 = vsyncpa [#allocation4], 1 }
 0x5a5   :  { %1735 = vsyncpa [#allocation4 + $0x1], 1 }
 0x5a6   :  { %1736 = vsyncpa [#allocation5], 1 }
 0x5a7   :  { %1738 = vsyncpa [#allocation5 + $0x1], 1 }

</bundles_post_ra>
